<compile_context>
chip_gen: v5e
topology: v5e:2x2
jax: 0.10.0
libtpu: 0.0.40
codegen_flags: <defaults>
</compile_context>

<pallas_src>
import math
import jax
import jax.numpy as jnp
from jax.experimental import pallas as pl
from jax.experimental.pallas import tpu as pltpu

# ----- hyper-parameters (small, consistent with the module) -----------------
NTOKEN     = 64           # vocabulary size
NTOKEN_PAD = 128          # lane-dense padded vocab for the decoder / output
NINP       = 32           # embedding / model dim (divisible by NHEAD)
NHEAD      = 2            # from script
NHID       = 64           # feed-forward hidden dim (kept small)
NLAYERS    = 2            # from script
SEQ        = 8
BATCH      = 2
ROWS       = BATCH * SEQ  # flattened activation rows
DHEAD      = NINP // NHEAD
NEG_INF    = -1e9         # additive causal-mask value (same effect as -inf)
LN_EPS     = 1e-5


def _layernorm(x, w, b):
    # f32 math (mandatory on v5e: no bf16 VPU).
    mu = jnp.mean(x, axis=-1, keepdims=True)
    var = jnp.mean((x - mu) ** 2, axis=-1, keepdims=True)
    return (x - mu) * jax.lax.rsqrt(var + LN_EPS) * w + b


def _mm(a, b):
    # bf16 MXU feeds, f32 accumulate.
    return jnp.dot(a.astype(jnp.bfloat16), b.astype(jnp.bfloat16),
                   preferred_element_type=jnp.float32)


def transformer_kernel(x_ref, pe_ref, mask_ref,
                       q_w_ref, q_b_ref, k_w_ref, k_b_ref, v_w_ref, v_b_ref,
                       out_w_ref, out_b_ref,
                       ln1_w_ref, ln1_b_ref, ln2_w_ref, ln2_b_ref,
                       ff1_w_ref, ff1_b_ref, ff2_w_ref, ff2_b_ref,
                       dec_w_ref, dec_b_ref,
                       o_ref):
    scale = 1.0 / math.sqrt(DHEAD)

    # embedding scale + positional encoding (dropout == identity, eval mode)
    x = x_ref[...] * math.sqrt(NINP) + pe_ref[...]        # (R, E) f32
    mask = mask_ref[...]                                  # (R, R) block-diag causal

    for l in range(NLAYERS):
        # ---- multi-head self-attention (per head, all batches at once) ------
        x_b = x.astype(jnp.bfloat16)
        heads = []
        for h in range(NHEAD):
            q = _mm(x_b, q_w_ref[l, h]) + q_b_ref[l, h]   # (R, Dh)
            k = _mm(x_b, k_w_ref[l, h]) + k_b_ref[l, h]   # (R, Dh)
            v = _mm(x_b, v_w_ref[l, h]) + v_b_ref[l, h]   # (R, Dh)
            s = _mm(q, k.T) * scale + mask                # (R, R)
            m = jnp.max(s, axis=-1, keepdims=True)
            e = jnp.exp(s - m)                            # f32 EUP
            denom = jnp.sum(e, axis=-1, keepdims=True)
            p = e * pl.reciprocal(denom, approx=True)     # EUP reciprocal
            heads.append(_mm(p, v))                       # (R, Dh), stays in vregs
        ctx = jnp.concatenate(heads, axis=-1)             # (R, E)
        attn_out = _mm(ctx, out_w_ref[l]) + out_b_ref[l]
        x = _layernorm(x + attn_out, ln1_w_ref[l], ln1_b_ref[l])

        # ---- feed-forward (ReLU) --------------------------------------------
        h1 = jnp.maximum(_mm(x, ff1_w_ref[l]) + ff1_b_ref[l], 0.0)
        ff = _mm(h1, ff2_w_ref[l]) + ff2_b_ref[l]
        x = _layernorm(x + ff, ln2_w_ref[l], ln2_b_ref[l])

    # ---- decoder + exact log_softmax over padded vocab ----------------------
    logits = _mm(x, dec_w_ref[...]) + dec_b_ref[...]      # (R, NTOKEN_PAD)
    lmax = jnp.max(logits, axis=-1, keepdims=True)
    shifted = logits - lmax
    lse = jnp.log(jnp.sum(jnp.exp(shifted), axis=-1, keepdims=True))
    o_ref[...] = shifted - lse                            # lane-dense store


def init_params(key):
    ks = jax.random.split(key, 16)
    u = lambda k, shape, a=0.1: jax.random.uniform(k, shape, jnp.float32, -a, a)

    params = {
        "emb": u(ks[0], (NTOKEN, NINP)),                         # nn.Embedding
        # per-head projection weights with (layer, head) leading axes,
        # already laid out as (in, out) for x @ W
        "q_w": u(ks[1], (NLAYERS, NHEAD, NINP, DHEAD)),
        "q_b": u(ks[2], (NLAYERS, NHEAD, 1, DHEAD)),
        "k_w": u(ks[3], (NLAYERS, NHEAD, NINP, DHEAD)),
        "k_b": u(ks[4], (NLAYERS, NHEAD, 1, DHEAD)),
        "v_w": u(ks[5], (NLAYERS, NHEAD, NINP, DHEAD)),
        "v_b": u(ks[6], (NLAYERS, NHEAD, 1, DHEAD)),
        "out_w": u(ks[7], (NLAYERS, NINP, NINP)),
        "out_b": u(ks[8], (NLAYERS, 1, NINP)),
        "ff1_w": u(ks[9], (NLAYERS, NINP, NHID)),
        "ff1_b": u(ks[10], (NLAYERS, 1, NHID)),
        "ff2_w": u(ks[11], (NLAYERS, NHID, NINP)),
        "ff2_b": u(ks[12], (NLAYERS, 1, NINP)),
        "ln1_w": jnp.ones((NLAYERS, 1, NINP), jnp.float32),
        "ln1_b": jnp.zeros((NLAYERS, 1, NINP), jnp.float32),
        "ln2_w": jnp.ones((NLAYERS, 1, NINP), jnp.float32),
        "ln2_b": jnp.zeros((NLAYERS, 1, NINP), jnp.float32),
    }

    # decoder (PyTorch stores (ntoken, ninp); kernel wants (ninp, ntoken)),
    # lane-padded to 128 columns.  Pad columns: weight 0, bias -1e9 so their
    # log-probs are effectively -inf and contribute nothing to the LSE.
    dec_w = u(ks[13], (NTOKEN, NINP)).T                          # (NINP, NTOKEN)
    dec_w = jnp.concatenate(
        [dec_w, jnp.zeros((NINP, NTOKEN_PAD - NTOKEN), jnp.float32)], axis=1)
    dec_b = jnp.concatenate(
        [jnp.zeros((1, NTOKEN), jnp.float32),
         jnp.full((1, NTOKEN_PAD - NTOKEN), NEG_INF, jnp.float32)], axis=1)
    params["dec_w"] = dec_w
    params["dec_b"] = dec_b

    # positional encoding table (max_len truncated to SEQ)
    position = jnp.arange(SEQ, dtype=jnp.float32)[:, None]
    div_term = jnp.exp(jnp.arange(0, NINP, 2, dtype=jnp.float32)
                       * (-math.log(10000.0) / NINP))
    pe = jnp.zeros((SEQ, NINP), jnp.float32)
    pe = pe.at[:, 0::2].set(jnp.sin(position * div_term))
    pe = pe.at[:, 1::2].set(jnp.cos(position * div_term))
    params["pe"] = pe

    # block-diagonal causal mask over the flattened (B*S) axis:
    # allowed iff same batch AND key position <= query position.
    idx = jnp.arange(ROWS)
    same_batch = (idx[:, None] // SEQ) == (idx[None, :] // SEQ)
    causal = (idx[:, None] % SEQ) >= (idx[None, :] % SEQ)
    params["mask"] = jnp.where(same_batch & causal, 0.0, NEG_INF).astype(jnp.float32)
    return params


def transformer_forward(tokens, params):
    # tokens: (S, B) int32, seq-first like the PyTorch module.
    emb = jnp.take(params["emb"], tokens, axis=0)            # (S, B, E)  (glue)
    x = jnp.transpose(emb, (1, 0, 2)).reshape(ROWS, NINP)    # batch-major flatten
    pe_tiled = jnp.tile(params["pe"], (BATCH, 1))            # (B*S, E)

    inputs = [
        x, pe_tiled, params["mask"],
        params["q_w"], params["q_b"], params["k_w"], params["k_b"],
        params["v_w"], params["v_b"],
        params["out_w"], params["out_b"],
        params["ln1_w"], params["ln1_b"], params["ln2_w"], params["ln2_b"],
        params["ff1_w"], params["ff1_b"], params["ff2_w"], params["ff2_b"],
        params["dec_w"], params["dec_b"],
    ]

    def full_spec(a):
        nd = a.ndim
        return pl.BlockSpec(a.shape, lambda i, nd=nd: (0,) * nd)

    out = pl.pallas_call(
        transformer_kernel,
        out_shape=jax.ShapeDtypeStruct((ROWS, NTOKEN_PAD), jnp.float32),
        grid=(1,),
        in_specs=[full_spec(a) for a in inputs],
        out_specs=pl.BlockSpec((ROWS, NTOKEN_PAD), lambda i: (0, 0)),
        compiler_params=pltpu.CompilerParams(
            dimension_semantics=("arbitrary",)),
    )(*inputs)

    # drop the lane-padding vocab columns, back to PyTorch's (S, B, ntoken)
    out = out[:, :NTOKEN]
    return out.reshape(BATCH, SEQ, NTOKEN).transpose(1, 0, 2)


if __name__ == "__main__":
    key = jax.random.PRNGKey(0)
    pkey, tkey = jax.random.split(key)
    params = init_params(pkey)
    tokens = jax.random.randint(tkey, (SEQ, BATCH), 0, NTOKEN, dtype=jnp.int32)

    log_probs = jax.jit(transformer_forward)(tokens, params)
    log_probs = jax.block_until_ready(log_probs)

    assert log_probs.shape == (SEQ, BATCH, NTOKEN)
    assert bool(jnp.all(jnp.isfinite(log_probs)))
    # log_softmax rows must (approximately) sum to 1 in prob space
    assert bool(jnp.allclose(jnp.sum(jnp.exp(log_probs), axis=-1), 1.0, atol=1e-4))
    print("KERNEL_OK")
</pallas_src>

<mosaic_0001>
module attributes {stable_mosaic.version = 11 : i64} {
  func.func @transformer_kernel(%arg0: i32, %arg1: memref<16x32xf32, #tpu.memory_space<vmem>>, %arg2: memref<16x32xf32, #tpu.memory_space<vmem>>, %arg3: memref<16x16xf32, #tpu.memory_space<vmem>>, %arg4: memref<2x2x32x16xf32, #tpu.memory_space<vmem>>, %arg5: memref<2x2x1x16xf32, #tpu.memory_space<vmem>>, %arg6: memref<2x2x32x16xf32, #tpu.memory_space<vmem>>, %arg7: memref<2x2x1x16xf32, #tpu.memory_space<vmem>>, %arg8: memref<2x2x32x16xf32, #tpu.memory_space<vmem>>, %arg9: memref<2x2x1x16xf32, #tpu.memory_space<vmem>>, %arg10: memref<2x32x32xf32, #tpu.memory_space<vmem>>, %arg11: memref<2x1x32xf32, #tpu.memory_space<vmem>>, %arg12: memref<2x1x32xf32, #tpu.memory_space<vmem>>, %arg13: memref<2x1x32xf32, #tpu.memory_space<vmem>>, %arg14: memref<2x1x32xf32, #tpu.memory_space<vmem>>, %arg15: memref<2x1x32xf32, #tpu.memory_space<vmem>>, %arg16: memref<2x32x64xf32, #tpu.memory_space<vmem>>, %arg17: memref<2x1x64xf32, #tpu.memory_space<vmem>>, %arg18: memref<2x64x32xf32, #tpu.memory_space<vmem>>, %arg19: memref<2x1x32xf32, #tpu.memory_space<vmem>>, %arg20: memref<32x128xf32, #tpu.memory_space<vmem>>, %arg21: memref<1x128xf32, #tpu.memory_space<vmem>>, %arg22: memref<16x128xf32, #tpu.memory_space<vmem>>) attributes {dimension_semantics = [#tpu.dimension_semantics<arbitrary>], iteration_bounds = array<i64: 1>, scalar_prefetch = 0 : i64, scratch_operands = 0 : i64, tpu.core_type = #tpu.core_type<tc>, window_params = [{pipeline_mode = #tpu.pipeline_mode<synchronous>, transform_indices = @transform_0, window_bounds = array<i64: 16, 32>}, {pipeline_mode = #tpu.pipeline_mode<synchronous>, transform_indices = @transform_1, window_bounds = array<i64: 16, 32>}, {pipeline_mode = #tpu.pipeline_mode<synchronous>, transform_indices = @transform_2, window_bounds = array<i64: 16, 16>}, {pipeline_mode = #tpu.pipeline_mode<synchronous>, transform_indices = @transform_3, window_bounds = array<i64: 2, 2, 32, 16>}, {pipeline_mode = #tpu.pipeline_mode<synchronous>, transform_indices = @transform_4, window_bounds = array<i64: 2, 2, 1, 16>}, {pipeline_mode = #tpu.pipeline_mode<synchronous>, transform_indices = @transform_5, window_bounds = array<i64: 2, 2, 32, 16>}, {pipeline_mode = #tpu.pipeline_mode<synchronous>, transform_indices = @transform_6, window_bounds = array<i64: 2, 2, 1, 16>}, {pipeline_mode = #tpu.pipeline_mode<synchronous>, transform_indices = @transform_7, window_bounds = array<i64: 2, 2, 32, 16>}, {pipeline_mode = #tpu.pipeline_mode<synchronous>, transform_indices = @transform_8, window_bounds = array<i64: 2, 2, 1, 16>}, {pipeline_mode = #tpu.pipeline_mode<synchronous>, transform_indices = @transform_9, window_bounds = array<i64: 2, 32, 32>}, {pipeline_mode = #tpu.pipeline_mode<synchronous>, transform_indices = @transform_10, window_bounds = array<i64: 2, 1, 32>}, {pipeline_mode = #tpu.pipeline_mode<synchronous>, transform_indices = @transform_11, window_bounds = array<i64: 2, 1, 32>}, {pipeline_mode = #tpu.pipeline_mode<synchronous>, transform_indices = @transform_12, window_bounds = array<i64: 2, 1, 32>}, {pipeline_mode = #tpu.pipeline_mode<synchronous>, transform_indices = @transform_13, window_bounds = array<i64: 2, 1, 32>}, {pipeline_mode = #tpu.pipeline_mode<synchronous>, transform_indices = @transform_14, window_bounds = array<i64: 2, 1, 32>}, {pipeline_mode = #tpu.pipeline_mode<synchronous>, transform_indices = @transform_15, window_bounds = array<i64: 2, 32, 64>}, {pipeline_mode = #tpu.pipeline_mode<synchronous>, transform_indices = @transform_16, window_bounds = array<i64: 2, 1, 64>}, {pipeline_mode = #tpu.pipeline_mode<synchronous>, transform_indices = @transform_17, window_bounds = array<i64: 2, 64, 32>}, {pipeline_mode = #tpu.pipeline_mode<synchronous>, transform_indices = @transform_18, window_bounds = array<i64: 2, 1, 32>}, {pipeline_mode = #tpu.pipeline_mode<synchronous>, transform_indices = @transform_19, window_bounds = array<i64: 32, 128>}, {pipeline_mode = #tpu.pipeline_mode<synchronous>, transform_indices = @transform_20, window_bounds = array<i64: 1, 128>}, {pipeline_mode = #tpu.pipeline_mode<synchronous>, transform_indices = @transform_21, window_bounds = array<i64: 16, 128>}]} {
    %c0 = arith.constant 0 : index
    %c0_0 = arith.constant 0 : index
    %0 = vector.load %arg1[%c0, %c0_0] : memref<16x32xf32, #tpu.memory_space<vmem>>, vector<16x32xf32>
    %cst = arith.constant 5.65685415 : f32
    %1 = vector.broadcast %cst : f32 to vector<16x32xf32>
    %2 = arith.mulf %0, %1 : vector<16x32xf32>
    %c0_1 = arith.constant 0 : index
    %c0_2 = arith.constant 0 : index
    %3 = vector.load %arg2[%c0_1, %c0_2] : memref<16x32xf32, #tpu.memory_space<vmem>>, vector<16x32xf32>
    %4 = arith.addf %2, %3 : vector<16x32xf32>
    %c0_3 = arith.constant 0 : index
    %c0_4 = arith.constant 0 : index
    %5 = vector.load %arg3[%c0_3, %c0_4] : memref<16x16xf32, #tpu.memory_space<vmem>>, vector<16x16xf32>
    %6 = arith.truncf %4 : vector<16x32xf32> to vector<16x32xbf16>
    %c0_5 = arith.constant 0 : index
    %c0_6 = arith.constant 0 : index
    %c0_7 = arith.constant 0 : index
    %c0_8 = arith.constant 0 : index
    %7 = vector.load %arg4[%c0_5, %c0_6, %c0_7, %c0_8] : memref<2x2x32x16xf32, #tpu.memory_space<vmem>>, vector<1x1x32x16xf32>
    %8 = vector.shape_cast %7 : vector<1x1x32x16xf32> to vector<32x16xf32>
    %9 = arith.truncf %8 : vector<32x16xf32> to vector<32x16xbf16>
    %cst_9 = arith.constant dense<0.000000e+00> : vector<16x16xf32>
    %10 = tpu.matmul %6, %9, %cst_9 {dimension_numbers = #tpu.dot_dimension_numbers<[1], [0], [0], [1], [0, 0, 1, 1], [], []>} : vector<16x32xbf16>, vector<32x16xbf16>, vector<16x16xf32> -> vector<16x16xf32>
    %c0_10 = arith.constant 0 : index
    %c0_11 = arith.constant 0 : index
    %c0_12 = arith.constant 0 : index
    %c0_13 = arith.constant 0 : index
    %11 = vector.load %arg5[%c0_10, %c0_11, %c0_12, %c0_13] : memref<2x2x1x16xf32, #tpu.memory_space<vmem>>, vector<1x1x1x16xf32>
    %12 = vector.shape_cast %11 : vector<1x1x1x16xf32> to vector<1x16xf32>
    %13 = vector.broadcast %12 : vector<1x16xf32> to vector<16x16xf32>
    %14 = arith.addf %10, %13 : vector<16x16xf32>
    %c0_14 = arith.constant 0 : index
    %c0_15 = arith.constant 0 : index
    %c0_16 = arith.constant 0 : index
    %c0_17 = arith.constant 0 : index
    %15 = vector.load %arg6[%c0_14, %c0_15, %c0_16, %c0_17] : memref<2x2x32x16xf32, #tpu.memory_space<vmem>>, vector<1x1x32x16xf32>
    %16 = vector.shape_cast %15 : vector<1x1x32x16xf32> to vector<32x16xf32>
    %17 = arith.truncf %16 : vector<32x16xf32> to vector<32x16xbf16>
    %cst_18 = arith.constant dense<0.000000e+00> : vector<16x16xf32>
    %18 = tpu.matmul %6, %17, %cst_18 {dimension_numbers = #tpu.dot_dimension_numbers<[1], [0], [0], [1], [0, 0, 1, 1], [], []>} : vector<16x32xbf16>, vector<32x16xbf16>, vector<16x16xf32> -> vector<16x16xf32>
    %c0_19 = arith.constant 0 : index
    %c0_20 = arith.constant 0 : index
    %c0_21 = arith.constant 0 : index
    %c0_22 = arith.constant 0 : index
    %19 = vector.load %arg7[%c0_19, %c0_20, %c0_21, %c0_22] : memref<2x2x1x16xf32, #tpu.memory_space<vmem>>, vector<1x1x1x16xf32>
    %20 = vector.shape_cast %19 : vector<1x1x1x16xf32> to vector<1x16xf32>
    %21 = vector.broadcast %20 : vector<1x16xf32> to vector<16x16xf32>
    %22 = arith.addf %18, %21 : vector<16x16xf32>
    %c0_23 = arith.constant 0 : index
    %c0_24 = arith.constant 0 : index
    %c0_25 = arith.constant 0 : index
    %c0_26 = arith.constant 0 : index
    %23 = vector.load %arg8[%c0_23, %c0_24, %c0_25, %c0_26] : memref<2x2x32x16xf32, #tpu.memory_space<vmem>>, vector<1x1x32x16xf32>
    %24 = vector.shape_cast %23 : vector<1x1x32x16xf32> to vector<32x16xf32>
    %25 = arith.truncf %24 : vector<32x16xf32> to vector<32x16xbf16>
    %cst_27 = arith.constant dense<0.000000e+00> : vector<16x16xf32>
    %26 = tpu.matmul %6, %25, %cst_27 {dimension_numbers = #tpu.dot_dimension_numbers<[1], [0], [0], [1], [0, 0, 1, 1], [], []>} : vector<16x32xbf16>, vector<32x16xbf16>, vector<16x16xf32> -> vector<16x16xf32>
    %c0_28 = arith.constant 0 : index
    %c0_29 = arith.constant 0 : index
    %c0_30 = arith.constant 0 : index
    %c0_31 = arith.constant 0 : index
    %27 = vector.load %arg9[%c0_28, %c0_29, %c0_30, %c0_31] : memref<2x2x1x16xf32, #tpu.memory_space<vmem>>, vector<1x1x1x16xf32>
    %28 = vector.shape_cast %27 : vector<1x1x1x16xf32> to vector<1x16xf32>
    %29 = vector.broadcast %28 : vector<1x16xf32> to vector<16x16xf32>
    %30 = arith.addf %26, %29 : vector<16x16xf32>
    %31 = tpu.transpose %22, [1, 0] : vector<16x16xf32> -> vector<16x16xf32>
    %32 = arith.truncf %14 : vector<16x16xf32> to vector<16x16xbf16>
    %33 = arith.truncf %31 : vector<16x16xf32> to vector<16x16xbf16>
    %cst_32 = arith.constant dense<0.000000e+00> : vector<16x16xf32>
    %34 = tpu.matmul %32, %33, %cst_32 {dimension_numbers = #tpu.dot_dimension_numbers<[1], [0], [0], [1], [0, 0, 1, 1], [], []>} : vector<16x16xbf16>, vector<16x16xbf16>, vector<16x16xf32> -> vector<16x16xf32>
    %cst_33 = arith.constant 2.500000e-01 : f32
    %35 = vector.broadcast %cst_33 : f32 to vector<16x16xf32>
    %36 = arith.mulf %34, %35 : vector<16x16xf32>
    %37 = arith.addf %36, %5 : vector<16x16xf32>
    %cst_34 = arith.constant dense<0xFF800000> : vector<16xf32>
    %38 = vector.multi_reduction <maximumf>, %37, %cst_34 [1] : vector<16x16xf32> to vector<16xf32>
    %39 = vector.shape_cast %38 : vector<16xf32> to vector<16x1xf32>
    %40 = vector.broadcast %39 : vector<16x1xf32> to vector<16x16xf32>
    %41 = arith.subf %37, %40 : vector<16x16xf32>
    %42 = math.exp %41 : vector<16x16xf32>
    %cst_35 = arith.constant dense<0.000000e+00> : vector<16xf32>
    %43 = vector.multi_reduction <add>, %42, %cst_35 [1] : vector<16x16xf32> to vector<16xf32>
    %44 = vector.shape_cast %43 : vector<16xf32> to vector<16x1xf32>
    %45 = tpu.reciprocal %44 {approx = true} : vector<16x1xf32> -> vector<16x1xf32>
    %46 = vector.broadcast %45 : vector<16x1xf32> to vector<16x16xf32>
    %47 = arith.mulf %42, %46 : vector<16x16xf32>
    %48 = arith.truncf %47 : vector<16x16xf32> to vector<16x16xbf16>
    %49 = arith.truncf %30 : vector<16x16xf32> to vector<16x16xbf16>
    %cst_36 = arith.constant dense<0.000000e+00> : vector<16x16xf32>
    %50 = tpu.matmul %48, %49, %cst_36 {dimension_numbers = #tpu.dot_dimension_numbers<[1], [0], [0], [1], [0, 0, 1, 1], [], []>} : vector<16x16xbf16>, vector<16x16xbf16>, vector<16x16xf32> -> vector<16x16xf32>
    %c0_37 = arith.constant 0 : index
    %c1 = arith.constant 1 : index
    %c0_38 = arith.constant 0 : index
    %c0_39 = arith.constant 0 : index
    %51 = vector.load %arg4[%c0_37, %c1, %c0_38, %c0_39] : memref<2x2x32x16xf32, #tpu.memory_space<vmem>>, vector<1x1x32x16xf32>
    %52 = vector.shape_cast %51 : vector<1x1x32x16xf32> to vector<32x16xf32>
    %53 = arith.truncf %52 : vector<32x16xf32> to vector<32x16xbf16>
    %cst_40 = arith.constant dense<0.000000e+00> : vector<16x16xf32>
    %54 = tpu.matmul %6, %53, %cst_40 {dimension_numbers = #tpu.dot_dimension_numbers<[1], [0], [0], [1], [0, 0, 1, 1], [], []>} : vector<16x32xbf16>, vector<32x16xbf16>, vector<16x16xf32> -> vector<16x16xf32>
    %c0_41 = arith.constant 0 : index
    %c1_42 = arith.constant 1 : index
    %c0_43 = arith.constant 0 : index
    %c0_44 = arith.constant 0 : index
    %55 = vector.load %arg5[%c0_41, %c1_42, %c0_43, %c0_44] : memref<2x2x1x16xf32, #tpu.memory_space<vmem>>, vector<1x1x1x16xf32>
    %56 = vector.shape_cast %55 : vector<1x1x1x16xf32> to vector<1x16xf32>
    %57 = vector.broadcast %56 : vector<1x16xf32> to vector<16x16xf32>
    %58 = arith.addf %54, %57 : vector<16x16xf32>
    %c0_45 = arith.constant 0 : index
    %c1_46 = arith.constant 1 : index
    %c0_47 = arith.constant 0 : index
    %c0_48 = arith.constant 0 : index
    %59 = vector.load %arg6[%c0_45, %c1_46, %c0_47, %c0_48] : memref<2x2x32x16xf32, #tpu.memory_space<vmem>>, vector<1x1x32x16xf32>
    %60 = vector.shape_cast %59 : vector<1x1x32x16xf32> to vector<32x16xf32>
    %61 = arith.truncf %60 : vector<32x16xf32> to vector<32x16xbf16>
    %cst_49 = arith.constant dense<0.000000e+00> : vector<16x16xf32>
    %62 = tpu.matmul %6, %61, %cst_49 {dimension_numbers = #tpu.dot_dimension_numbers<[1], [0], [0], [1], [0, 0, 1, 1], [], []>} : vector<16x32xbf16>, vector<32x16xbf16>, vector<16x16xf32> -> vector<16x16xf32>
    %c0_50 = arith.constant 0 : index
    %c1_51 = arith.constant 1 : index
    %c0_52 = arith.constant 0 : index
    %c0_53 = arith.constant 0 : index
    %63 = vector.load %arg7[%c0_50, %c1_51, %c0_52, %c0_53] : memref<2x2x1x16xf32, #tpu.memory_space<vmem>>, vector<1x1x1x16xf32>
    %64 = vector.shape_cast %63 : vector<1x1x1x16xf32> to vector<1x16xf32>
    %65 = vector.broadcast %64 : vector<1x16xf32> to vector<16x16xf32>
    %66 = arith.addf %62, %65 : vector<16x16xf32>
    %c0_54 = arith.constant 0 : index
    %c1_55 = arith.constant 1 : index
    %c0_56 = arith.constant 0 : index
    %c0_57 = arith.constant 0 : index
    %67 = vector.load %arg8[%c0_54, %c1_55, %c0_56, %c0_57] : memref<2x2x32x16xf32, #tpu.memory_space<vmem>>, vector<1x1x32x16xf32>
    %68 = vector.shape_cast %67 : vector<1x1x32x16xf32> to vector<32x16xf32>
    %69 = arith.truncf %68 : vector<32x16xf32> to vector<32x16xbf16>
    %cst_58 = arith.constant dense<0.000000e+00> : vector<16x16xf32>
    %70 = tpu.matmul %6, %69, %cst_58 {dimension_numbers = #tpu.dot_dimension_numbers<[1], [0], [0], [1], [0, 0, 1, 1], [], []>} : vector<16x32xbf16>, vector<32x16xbf16>, vector<16x16xf32> -> vector<16x16xf32>
    %c0_59 = arith.constant 0 : index
    %c1_60 = arith.constant 1 : index
    %c0_61 = arith.constant 0 : index
    %c0_62 = arith.constant 0 : index
    %71 = vector.load %arg9[%c0_59, %c1_60, %c0_61, %c0_62] : memref<2x2x1x16xf32, #tpu.memory_space<vmem>>, vector<1x1x1x16xf32>
    %72 = vector.shape_cast %71 : vector<1x1x1x16xf32> to vector<1x16xf32>
    %73 = vector.broadcast %72 : vector<1x16xf32> to vector<16x16xf32>
    %74 = arith.addf %70, %73 : vector<16x16xf32>
    %75 = tpu.transpose %66, [1, 0] : vector<16x16xf32> -> vector<16x16xf32>
    %76 = arith.truncf %58 : vector<16x16xf32> to vector<16x16xbf16>
    %77 = arith.truncf %75 : vector<16x16xf32> to vector<16x16xbf16>
    %cst_63 = arith.constant dense<0.000000e+00> : vector<16x16xf32>
    %78 = tpu.matmul %76, %77, %cst_63 {dimension_numbers = #tpu.dot_dimension_numbers<[1], [0], [0], [1], [0, 0, 1, 1], [], []>} : vector<16x16xbf16>, vector<16x16xbf16>, vector<16x16xf32> -> vector<16x16xf32>
    %cst_64 = arith.constant 2.500000e-01 : f32
    %79 = vector.broadcast %cst_64 : f32 to vector<16x16xf32>
    %80 = arith.mulf %78, %79 : vector<16x16xf32>
    %81 = arith.addf %80, %5 : vector<16x16xf32>
    %cst_65 = arith.constant dense<0xFF800000> : vector<16xf32>
    %82 = vector.multi_reduction <maximumf>, %81, %cst_65 [1] : vector<16x16xf32> to vector<16xf32>
    %83 = vector.shape_cast %82 : vector<16xf32> to vector<16x1xf32>
    %84 = vector.broadcast %83 : vector<16x1xf32> to vector<16x16xf32>
    %85 = arith.subf %81, %84 : vector<16x16xf32>
    %86 = math.exp %85 : vector<16x16xf32>
    %cst_66 = arith.constant dense<0.000000e+00> : vector<16xf32>
    %87 = vector.multi_reduction <add>, %86, %cst_66 [1] : vector<16x16xf32> to vector<16xf32>
    %88 = vector.shape_cast %87 : vector<16xf32> to vector<16x1xf32>
    %89 = tpu.reciprocal %88 {approx = true} : vector<16x1xf32> -> vector<16x1xf32>
    %90 = vector.broadcast %89 : vector<16x1xf32> to vector<16x16xf32>
    %91 = arith.mulf %86, %90 : vector<16x16xf32>
    %92 = arith.truncf %91 : vector<16x16xf32> to vector<16x16xbf16>
    %93 = arith.truncf %74 : vector<16x16xf32> to vector<16x16xbf16>
    %cst_67 = arith.constant dense<0.000000e+00> : vector<16x16xf32>
    %94 = tpu.matmul %92, %93, %cst_67 {dimension_numbers = #tpu.dot_dimension_numbers<[1], [0], [0], [1], [0, 0, 1, 1], [], []>} : vector<16x16xbf16>, vector<16x16xbf16>, vector<16x16xf32> -> vector<16x16xf32>
    %95 = tpu.concatenate %50, %94 in 1 : vector<16x16xf32>, vector<16x16xf32> -> vector<16x32xf32>
    %c0_68 = arith.constant 0 : index
    %c0_69 = arith.constant 0 : index
    %c0_70 = arith.constant 0 : index
    %96 = vector.load %arg10[%c0_68, %c0_69, %c0_70] : memref<2x32x32xf32, #tpu.memory_space<vmem>>, vector<1x32x32xf32>
    %97 = vector.shape_cast %96 : vector<1x32x32xf32> to vector<32x32xf32>
    %98 = arith.truncf %95 : vector<16x32xf32> to vector<16x32xbf16>
    %99 = arith.truncf %97 : vector<32x32xf32> to vector<32x32xbf16>
    %cst_71 = arith.constant dense<0.000000e+00> : vector<16x32xf32>
    %100 = tpu.matmul %98, %99, %cst_71 {dimension_numbers = #tpu.dot_dimension_numbers<[1], [0], [0], [1], [0, 0, 1, 1], [], []>} : vector<16x32xbf16>, vector<32x32xbf16>, vector<16x32xf32> -> vector<16x32xf32>
    %c0_72 = arith.constant 0 : index
    %c0_73 = arith.constant 0 : index
    %c0_74 = arith.constant 0 : index
    %101 = vector.load %arg11[%c0_72, %c0_73, %c0_74] : memref<2x1x32xf32, #tpu.memory_space<vmem>>, vector<1x1x32xf32>
    %102 = vector.shape_cast %101 : vector<1x1x32xf32> to vector<1x32xf32>
    %103 = vector.broadcast %102 : vector<1x32xf32> to vector<16x32xf32>
    %104 = arith.addf %100, %103 : vector<16x32xf32>
    %105 = arith.addf %4, %104 : vector<16x32xf32>
    %c0_75 = arith.constant 0 : index
    %c0_76 = arith.constant 0 : index
    %c0_77 = arith.constant 0 : index
    %106 = vector.load %arg12[%c0_75, %c0_76, %c0_77] : memref<2x1x32xf32, #tpu.memory_space<vmem>>, vector<1x1x32xf32>
    %107 = vector.shape_cast %106 : vector<1x1x32xf32> to vector<1x32xf32>
    %c0_78 = arith.constant 0 : index
    %c0_79 = arith.constant 0 : index
    %c0_80 = arith.constant 0 : index
    %108 = vector.load %arg13[%c0_78, %c0_79, %c0_80] : memref<2x1x32xf32, #tpu.memory_space<vmem>>, vector<1x1x32xf32>
    %109 = vector.shape_cast %108 : vector<1x1x32xf32> to vector<1x32xf32>
    %cst_81 = arith.constant dense<0.000000e+00> : vector<16xf32>
    %110 = vector.multi_reduction <add>, %105, %cst_81 [1] : vector<16x32xf32> to vector<16xf32>
    %111 = vector.shape_cast %110 : vector<16xf32> to vector<16x1xf32>
    %cst_82 = arith.constant 3.200000e+01 : f32
    %112 = vector.broadcast %cst_82 : f32 to vector<16x1xf32>
    %113 = arith.divf %111, %112 : vector<16x1xf32>
    %114 = vector.broadcast %113 : vector<16x1xf32> to vector<16x32xf32>
    %115 = arith.subf %105, %114 : vector<16x32xf32>
    %116 = arith.mulf %115, %115 : vector<16x32xf32>
    %cst_83 = arith.constant dense<0.000000e+00> : vector<16xf32>
    %117 = vector.multi_reduction <add>, %116, %cst_83 [1] : vector<16x32xf32> to vector<16xf32>
    %118 = vector.shape_cast %117 : vector<16xf32> to vector<16x1xf32>
    %cst_84 = arith.constant 3.200000e+01 : f32
    %119 = vector.broadcast %cst_84 : f32 to vector<16x1xf32>
    %120 = arith.divf %118, %119 : vector<16x1xf32>
    %121 = vector.broadcast %113 : vector<16x1xf32> to vector<16x32xf32>
    %122 = arith.subf %105, %121 : vector<16x32xf32>
    %cst_85 = arith.constant 9.99999974E-6 : f32
    %123 = vector.broadcast %cst_85 : f32 to vector<16x1xf32>
    %124 = arith.addf %120, %123 : vector<16x1xf32>
    %125 = math.rsqrt %124 : vector<16x1xf32>
    %126 = vector.broadcast %125 : vector<16x1xf32> to vector<16x32xf32>
    %127 = arith.mulf %122, %126 : vector<16x32xf32>
    %128 = vector.broadcast %107 : vector<1x32xf32> to vector<16x32xf32>
    %129 = arith.mulf %127, %128 : vector<16x32xf32>
    %130 = vector.broadcast %109 : vector<1x32xf32> to vector<16x32xf32>
    %131 = arith.addf %129, %130 : vector<16x32xf32>
    %c0_86 = arith.constant 0 : index
    %c0_87 = arith.constant 0 : index
    %c0_88 = arith.constant 0 : index
    %132 = vector.load %arg16[%c0_86, %c0_87, %c0_88] : memref<2x32x64xf32, #tpu.memory_space<vmem>>, vector<1x32x64xf32>
    %133 = vector.shape_cast %132 : vector<1x32x64xf32> to vector<32x64xf32>
    %134 = arith.truncf %131 : vector<16x32xf32> to vector<16x32xbf16>
    %135 = arith.truncf %133 : vector<32x64xf32> to vector<32x64xbf16>
    %cst_89 = arith.constant dense<0.000000e+00> : vector<16x64xf32>
    %136 = tpu.matmul %134, %135, %cst_89 {dimension_numbers = #tpu.dot_dimension_numbers<[1], [0], [0], [1], [0, 0, 1, 1], [], []>} : vector<16x32xbf16>, vector<32x64xbf16>, vector<16x64xf32> -> vector<16x64xf32>
    %c0_90 = arith.constant 0 : index
    %c0_91 = arith.constant 0 : index
    %c0_92 = arith.constant 0 : index
    %137 = vector.load %arg17[%c0_90, %c0_91, %c0_92] : memref<2x1x64xf32, #tpu.memory_space<vmem>>, vector<1x1x64xf32>
    %138 = vector.shape_cast %137 : vector<1x1x64xf32> to vector<1x64xf32>
    %139 = vector.broadcast %138 : vector<1x64xf32> to vector<16x64xf32>
    %140 = arith.addf %136, %139 : vector<16x64xf32>
    %cst_93 = arith.constant 0.000000e+00 : f32
    %141 = vector.broadcast %cst_93 : f32 to vector<16x64xf32>
    %142 = arith.maximumf %140, %141 : vector<16x64xf32>
    %c0_94 = arith.constant 0 : index
    %c0_95 = arith.constant 0 : index
    %c0_96 = arith.constant 0 : index
    %143 = vector.load %arg18[%c0_94, %c0_95, %c0_96] : memref<2x64x32xf32, #tpu.memory_space<vmem>>, vector<1x64x32xf32>
    %144 = vector.shape_cast %143 : vector<1x64x32xf32> to vector<64x32xf32>
    %145 = arith.truncf %142 : vector<16x64xf32> to vector<16x64xbf16>
    %146 = arith.truncf %144 : vector<64x32xf32> to vector<64x32xbf16>
    %cst_97 = arith.constant dense<0.000000e+00> : vector<16x32xf32>
    %147 = tpu.matmul %145, %146, %cst_97 {dimension_numbers = #tpu.dot_dimension_numbers<[1], [0], [0], [1], [0, 0, 1, 1], [], []>} : vector<16x64xbf16>, vector<64x32xbf16>, vector<16x32xf32> -> vector<16x32xf32>
    %c0_98 = arith.constant 0 : index
    %c0_99 = arith.constant 0 : index
    %c0_100 = arith.constant 0 : index
    %148 = vector.load %arg19[%c0_98, %c0_99, %c0_100] : memref<2x1x32xf32, #tpu.memory_space<vmem>>, vector<1x1x32xf32>
    %149 = vector.shape_cast %148 : vector<1x1x32xf32> to vector<1x32xf32>
    %150 = vector.broadcast %149 : vector<1x32xf32> to vector<16x32xf32>
    %151 = arith.addf %147, %150 : vector<16x32xf32>
    %152 = arith.addf %131, %151 : vector<16x32xf32>
    %c0_101 = arith.constant 0 : index
    %c0_102 = arith.constant 0 : index
    %c0_103 = arith.constant 0 : index
    %153 = vector.load %arg14[%c0_101, %c0_102, %c0_103] : memref<2x1x32xf32, #tpu.memory_space<vmem>>, vector<1x1x32xf32>
    %154 = vector.shape_cast %153 : vector<1x1x32xf32> to vector<1x32xf32>
    %c0_104 = arith.constant 0 : index
    %c0_105 = arith.constant 0 : index
    %c0_106 = arith.constant 0 : index
    %155 = vector.load %arg15[%c0_104, %c0_105, %c0_106] : memref<2x1x32xf32, #tpu.memory_space<vmem>>, vector<1x1x32xf32>
    %156 = vector.shape_cast %155 : vector<1x1x32xf32> to vector<1x32xf32>
    %cst_107 = arith.constant dense<0.000000e+00> : vector<16xf32>
    %157 = vector.multi_reduction <add>, %152, %cst_107 [1] : vector<16x32xf32> to vector<16xf32>
    %158 = vector.shape_cast %157 : vector<16xf32> to vector<16x1xf32>
    %cst_108 = arith.constant 3.200000e+01 : f32
    %159 = vector.broadcast %cst_108 : f32 to vector<16x1xf32>
    %160 = arith.divf %158, %159 : vector<16x1xf32>
    %161 = vector.broadcast %160 : vector<16x1xf32> to vector<16x32xf32>
    %162 = arith.subf %152, %161 : vector<16x32xf32>
    %163 = arith.mulf %162, %162 : vector<16x32xf32>
    %cst_109 = arith.constant dense<0.000000e+00> : vector<16xf32>
    %164 = vector.multi_reduction <add>, %163, %cst_109 [1] : vector<16x32xf32> to vector<16xf32>
    %165 = vector.shape_cast %164 : vector<16xf32> to vector<16x1xf32>
    %cst_110 = arith.constant 3.200000e+01 : f32
    %166 = vector.broadcast %cst_110 : f32 to vector<16x1xf32>
    %167 = arith.divf %165, %166 : vector<16x1xf32>
    %168 = vector.broadcast %160 : vector<16x1xf32> to vector<16x32xf32>
    %169 = arith.subf %152, %168 : vector<16x32xf32>
    %cst_111 = arith.constant 9.99999974E-6 : f32
    %170 = vector.broadcast %cst_111 : f32 to vector<16x1xf32>
    %171 = arith.addf %167, %170 : vector<16x1xf32>
    %172 = math.rsqrt %171 : vector<16x1xf32>
    %173 = vector.broadcast %172 : vector<16x1xf32> to vector<16x32xf32>
    %174 = arith.mulf %169, %173 : vector<16x32xf32>
    %175 = vector.broadcast %154 : vector<1x32xf32> to vector<16x32xf32>
    %176 = arith.mulf %174, %175 : vector<16x32xf32>
    %177 = vector.broadcast %156 : vector<1x32xf32> to vector<16x32xf32>
    %178 = arith.addf %176, %177 : vector<16x32xf32>
    %179 = arith.truncf %178 : vector<16x32xf32> to vector<16x32xbf16>
    %c1_112 = arith.constant 1 : index
    %c0_113 = arith.constant 0 : index
    %c0_114 = arith.constant 0 : index
    %c0_115 = arith.constant 0 : index
    %180 = vector.load %arg4[%c1_112, %c0_113, %c0_114, %c0_115] : memref<2x2x32x16xf32, #tpu.memory_space<vmem>>, vector<1x1x32x16xf32>
    %181 = vector.shape_cast %180 : vector<1x1x32x16xf32> to vector<32x16xf32>
    %182 = arith.truncf %181 : vector<32x16xf32> to vector<32x16xbf16>
    %cst_116 = arith.constant dense<0.000000e+00> : vector<16x16xf32>
    %183 = tpu.matmul %179, %182, %cst_116 {dimension_numbers = #tpu.dot_dimension_numbers<[1], [0], [0], [1], [0, 0, 1, 1], [], []>} : vector<16x32xbf16>, vector<32x16xbf16>, vector<16x16xf32> -> vector<16x16xf32>
    %c1_117 = arith.constant 1 : index
    %c0_118 = arith.constant 0 : index
    %c0_119 = arith.constant 0 : index
    %c0_120 = arith.constant 0 : index
    %184 = vector.load %arg5[%c1_117, %c0_118, %c0_119, %c0_120] : memref<2x2x1x16xf32, #tpu.memory_space<vmem>>, vector<1x1x1x16xf32>
    %185 = vector.shape_cast %184 : vector<1x1x1x16xf32> to vector<1x16xf32>
    %186 = vector.broadcast %185 : vector<1x16xf32> to vector<16x16xf32>
    %187 = arith.addf %183, %186 : vector<16x16xf32>
    %c1_121 = arith.constant 1 : index
    %c0_122 = arith.constant 0 : index
    %c0_123 = arith.constant 0 : index
    %c0_124 = arith.constant 0 : index
    %188 = vector.load %arg6[%c1_121, %c0_122, %c0_123, %c0_124] : memref<2x2x32x16xf32, #tpu.memory_space<vmem>>, vector<1x1x32x16xf32>
    %189 = vector.shape_cast %188 : vector<1x1x32x16xf32> to vector<32x16xf32>
    %190 = arith.truncf %189 : vector<32x16xf32> to vector<32x16xbf16>
    %cst_125 = arith.constant dense<0.000000e+00> : vector<16x16xf32>
    %191 = tpu.matmul %179, %190, %cst_125 {dimension_numbers = #tpu.dot_dimension_numbers<[1], [0], [0], [1], [0, 0, 1, 1], [], []>} : vector<16x32xbf16>, vector<32x16xbf16>, vector<16x16xf32> -> vector<16x16xf32>
    %c1_126 = arith.constant 1 : index
    %c0_127 = arith.constant 0 : index
    %c0_128 = arith.constant 0 : index
    %c0_129 = arith.constant 0 : index
    %192 = vector.load %arg7[%c1_126, %c0_127, %c0_128, %c0_129] : memref<2x2x1x16xf32, #tpu.memory_space<vmem>>, vector<1x1x1x16xf32>
    %193 = vector.shape_cast %192 : vector<1x1x1x16xf32> to vector<1x16xf32>
    %194 = vector.broadcast %193 : vector<1x16xf32> to vector<16x16xf32>
    %195 = arith.addf %191, %194 : vector<16x16xf32>
    %c1_130 = arith.constant 1 : index
    %c0_131 = arith.constant 0 : index
    %c0_132 = arith.constant 0 : index
    %c0_133 = arith.constant 0 : index
    %196 = vector.load %arg8[%c1_130, %c0_131, %c0_132, %c0_133] : memref<2x2x32x16xf32, #tpu.memory_space<vmem>>, vector<1x1x32x16xf32>
    %197 = vector.shape_cast %196 : vector<1x1x32x16xf32> to vector<32x16xf32>
    %198 = arith.truncf %197 : vector<32x16xf32> to vector<32x16xbf16>
    %cst_134 = arith.constant dense<0.000000e+00> : vector<16x16xf32>
    %199 = tpu.matmul %179, %198, %cst_134 {dimension_numbers = #tpu.dot_dimension_numbers<[1], [0], [0], [1], [0, 0, 1, 1], [], []>} : vector<16x32xbf16>, vector<32x16xbf16>, vector<16x16xf32> -> vector<16x16xf32>
    %c1_135 = arith.constant 1 : index
    %c0_136 = arith.constant 0 : index
    %c0_137 = arith.constant 0 : index
    %c0_138 = arith.constant 0 : index
    %200 = vector.load %arg9[%c1_135, %c0_136, %c0_137, %c0_138] : memref<2x2x1x16xf32, #tpu.memory_space<vmem>>, vector<1x1x1x16xf32>
    %201 = vector.shape_cast %200 : vector<1x1x1x16xf32> to vector<1x16xf32>
    %202 = vector.broadcast %201 : vector<1x16xf32> to vector<16x16xf32>
    %203 = arith.addf %199, %202 : vector<16x16xf32>
    %204 = tpu.transpose %195, [1, 0] : vector<16x16xf32> -> vector<16x16xf32>
    %205 = arith.truncf %187 : vector<16x16xf32> to vector<16x16xbf16>
    %206 = arith.truncf %204 : vector<16x16xf32> to vector<16x16xbf16>
    %cst_139 = arith.constant dense<0.000000e+00> : vector<16x16xf32>
    %207 = tpu.matmul %205, %206, %cst_139 {dimension_numbers = #tpu.dot_dimension_numbers<[1], [0], [0], [1], [0, 0, 1, 1], [], []>} : vector<16x16xbf16>, vector<16x16xbf16>, vector<16x16xf32> -> vector<16x16xf32>
    %cst_140 = arith.constant 2.500000e-01 : f32
    %208 = vector.broadcast %cst_140 : f32 to vector<16x16xf32>
    %209 = arith.mulf %207, %208 : vector<16x16xf32>
    %210 = arith.addf %209, %5 : vector<16x16xf32>
    %cst_141 = arith.constant dense<0xFF800000> : vector<16xf32>
    %211 = vector.multi_reduction <maximumf>, %210, %cst_141 [1] : vector<16x16xf32> to vector<16xf32>
    %212 = vector.shape_cast %211 : vector<16xf32> to vector<16x1xf32>
    %213 = vector.broadcast %212 : vector<16x1xf32> to vector<16x16xf32>
    %214 = arith.subf %210, %213 : vector<16x16xf32>
    %215 = math.exp %214 : vector<16x16xf32>
    %cst_142 = arith.constant dense<0.000000e+00> : vector<16xf32>
    %216 = vector.multi_reduction <add>, %215, %cst_142 [1] : vector<16x16xf32> to vector<16xf32>
    %217 = vector.shape_cast %216 : vector<16xf32> to vector<16x1xf32>
    %218 = tpu.reciprocal %217 {approx = true} : vector<16x1xf32> -> vector<16x1xf32>
    %219 = vector.broadcast %218 : vector<16x1xf32> to vector<16x16xf32>
    %220 = arith.mulf %215, %219 : vector<16x16xf32>
    %221 = arith.truncf %220 : vector<16x16xf32> to vector<16x16xbf16>
    %222 = arith.truncf %203 : vector<16x16xf32> to vector<16x16xbf16>
    %cst_143 = arith.constant dense<0.000000e+00> : vector<16x16xf32>
    %223 = tpu.matmul %221, %222, %cst_143 {dimension_numbers = #tpu.dot_dimension_numbers<[1], [0], [0], [1], [0, 0, 1, 1], [], []>} : vector<16x16xbf16>, vector<16x16xbf16>, vector<16x16xf32> -> vector<16x16xf32>
    %c1_144 = arith.constant 1 : index
    %c1_145 = arith.constant 1 : index
    %c0_146 = arith.constant 0 : index
    %c0_147 = arith.constant 0 : index
    %224 = vector.load %arg4[%c1_144, %c1_145, %c0_146, %c0_147] : memref<2x2x32x16xf32, #tpu.memory_space<vmem>>, vector<1x1x32x16xf32>
    %225 = vector.shape_cast %224 : vector<1x1x32x16xf32> to vector<32x16xf32>
    %226 = arith.truncf %225 : vector<32x16xf32> to vector<32x16xbf16>
    %cst_148 = arith.constant dense<0.000000e+00> : vector<16x16xf32>
    %227 = tpu.matmul %179, %226, %cst_148 {dimension_numbers = #tpu.dot_dimension_numbers<[1], [0], [0], [1], [0, 0, 1, 1], [], []>} : vector<16x32xbf16>, vector<32x16xbf16>, vector<16x16xf32> -> vector<16x16xf32>
    %c1_149 = arith.constant 1 : index
    %c1_150 = arith.constant 1 : index
    %c0_151 = arith.constant 0 : index
    %c0_152 = arith.constant 0 : index
    %228 = vector.load %arg5[%c1_149, %c1_150, %c0_151, %c0_152] : memref<2x2x1x16xf32, #tpu.memory_space<vmem>>, vector<1x1x1x16xf32>
    %229 = vector.shape_cast %228 : vector<1x1x1x16xf32> to vector<1x16xf32>
    %230 = vector.broadcast %229 : vector<1x16xf32> to vector<16x16xf32>
    %231 = arith.addf %227, %230 : vector<16x16xf32>
    %c1_153 = arith.constant 1 : index
    %c1_154 = arith.constant 1 : index
    %c0_155 = arith.constant 0 : index
    %c0_156 = arith.constant 0 : index
    %232 = vector.load %arg6[%c1_153, %c1_154, %c0_155, %c0_156] : memref<2x2x32x16xf32, #tpu.memory_space<vmem>>, vector<1x1x32x16xf32>
    %233 = vector.shape_cast %232 : vector<1x1x32x16xf32> to vector<32x16xf32>
    %234 = arith.truncf %233 : vector<32x16xf32> to vector<32x16xbf16>
    %cst_157 = arith.constant dense<0.000000e+00> : vector<16x16xf32>
    %235 = tpu.matmul %179, %234, %cst_157 {dimension_numbers = #tpu.dot_dimension_numbers<[1], [0], [0], [1], [0, 0, 1, 1], [], []>} : vector<16x32xbf16>, vector<32x16xbf16>, vector<16x16xf32> -> vector<16x16xf32>
    %c1_158 = arith.constant 1 : index
    %c1_159 = arith.constant 1 : index
    %c0_160 = arith.constant 0 : index
    %c0_161 = arith.constant 0 : index
    %236 = vector.load %arg7[%c1_158, %c1_159, %c0_160, %c0_161] : memref<2x2x1x16xf32, #tpu.memory_space<vmem>>, vector<1x1x1x16xf32>
    %237 = vector.shape_cast %236 : vector<1x1x1x16xf32> to vector<1x16xf32>
    %238 = vector.broadcast %237 : vector<1x16xf32> to vector<16x16xf32>
    %239 = arith.addf %235, %238 : vector<16x16xf32>
    %c1_162 = arith.constant 1 : index
    %c1_163 = arith.constant 1 : index
    %c0_164 = arith.constant 0 : index
    %c0_165 = arith.constant 0 : index
    %240 = vector.load %arg8[%c1_162, %c1_163, %c0_164, %c0_165] : memref<2x2x32x16xf32, #tpu.memory_space<vmem>>, vector<1x1x32x16xf32>
    %241 = vector.shape_cast %240 : vector<1x1x32x16xf32> to vector<32x16xf32>
    %242 = arith.truncf %241 : vector<32x16xf32> to vector<32x16xbf16>
    %cst_166 = arith.constant dense<0.000000e+00> : vector<16x16xf32>
    %243 = tpu.matmul %179, %242, %cst_166 {dimension_numbers = #tpu.dot_dimension_numbers<[1], [0], [0], [1], [0, 0, 1, 1], [], []>} : vector<16x32xbf16>, vector<32x16xbf16>, vector<16x16xf32> -> vector<16x16xf32>
    %c1_167 = arith.constant 1 : index
    %c1_168 = arith.constant 1 : index
    %c0_169 = arith.constant 0 : index
    %c0_170 = arith.constant 0 : index
    %244 = vector.load %arg9[%c1_167, %c1_168, %c0_169, %c0_170] : memref<2x2x1x16xf32, #tpu.memory_space<vmem>>, vector<1x1x1x16xf32>
    %245 = vector.shape_cast %244 : vector<1x1x1x16xf32> to vector<1x16xf32>
    %246 = vector.broadcast %245 : vector<1x16xf32> to vector<16x16xf32>
    %247 = arith.addf %243, %246 : vector<16x16xf32>
    %248 = tpu.transpose %239, [1, 0] : vector<16x16xf32> -> vector<16x16xf32>
    %249 = arith.truncf %231 : vector<16x16xf32> to vector<16x16xbf16>
    %250 = arith.truncf %248 : vector<16x16xf32> to vector<16x16xbf16>
    %cst_171 = arith.constant dense<0.000000e+00> : vector<16x16xf32>
    %251 = tpu.matmul %249, %250, %cst_171 {dimension_numbers = #tpu.dot_dimension_numbers<[1], [0], [0], [1], [0, 0, 1, 1], [], []>} : vector<16x16xbf16>, vector<16x16xbf16>, vector<16x16xf32> -> vector<16x16xf32>
    %cst_172 = arith.constant 2.500000e-01 : f32
    %252 = vector.broadcast %cst_172 : f32 to vector<16x16xf32>
    %253 = arith.mulf %251, %252 : vector<16x16xf32>
    %254 = arith.addf %253, %5 : vector<16x16xf32>
    %cst_173 = arith.constant dense<0xFF800000> : vector<16xf32>
    %255 = vector.multi_reduction <maximumf>, %254, %cst_173 [1] : vector<16x16xf32> to vector<16xf32>
    %256 = vector.shape_cast %255 : vector<16xf32> to vector<16x1xf32>
    %257 = vector.broadcast %256 : vector<16x1xf32> to vector<16x16xf32>
    %258 = arith.subf %254, %257 : vector<16x16xf32>
    %259 = math.exp %258 : vector<16x16xf32>
    %cst_174 = arith.constant dense<0.000000e+00> : vector<16xf32>
    %260 = vector.multi_reduction <add>, %259, %cst_174 [1] : vector<16x16xf32> to vector<16xf32>
    %261 = vector.shape_cast %260 : vector<16xf32> to vector<16x1xf32>
    %262 = tpu.reciprocal %261 {approx = true} : vector<16x1xf32> -> vector<16x1xf32>
    %263 = vector.broadcast %262 : vector<16x1xf32> to vector<16x16xf32>
    %264 = arith.mulf %259, %263 : vector<16x16xf32>
    %265 = arith.truncf %264 : vector<16x16xf32> to vector<16x16xbf16>
    %266 = arith.truncf %247 : vector<16x16xf32> to vector<16x16xbf16>
    %cst_175 = arith.constant dense<0.000000e+00> : vector<16x16xf32>
    %267 = tpu.matmul %265, %266, %cst_175 {dimension_numbers = #tpu.dot_dimension_numbers<[1], [0], [0], [1], [0, 0, 1, 1], [], []>} : vector<16x16xbf16>, vector<16x16xbf16>, vector<16x16xf32> -> vector<16x16xf32>
    %268 = tpu.concatenate %223, %267 in 1 : vector<16x16xf32>, vector<16x16xf32> -> vector<16x32xf32>
    %c1_176 = arith.constant 1 : index
    %c0_177 = arith.constant 0 : index
    %c0_178 = arith.constant 0 : index
    %269 = vector.load %arg10[%c1_176, %c0_177, %c0_178] : memref<2x32x32xf32, #tpu.memory_space<vmem>>, vector<1x32x32xf32>
    %270 = vector.shape_cast %269 : vector<1x32x32xf32> to vector<32x32xf32>
    %271 = arith.truncf %268 : vector<16x32xf32> to vector<16x32xbf16>
    %272 = arith.truncf %270 : vector<32x32xf32> to vector<32x32xbf16>
    %cst_179 = arith.constant dense<0.000000e+00> : vector<16x32xf32>
    %273 = tpu.matmul %271, %272, %cst_179 {dimension_numbers = #tpu.dot_dimension_numbers<[1], [0], [0], [1], [0, 0, 1, 1], [], []>} : vector<16x32xbf16>, vector<32x32xbf16>, vector<16x32xf32> -> vector<16x32xf32>
    %c1_180 = arith.constant 1 : index
    %c0_181 = arith.constant 0 : index
    %c0_182 = arith.constant 0 : index
    %274 = vector.load %arg11[%c1_180, %c0_181, %c0_182] : memref<2x1x32xf32, #tpu.memory_space<vmem>>, vector<1x1x32xf32>
    %275 = vector.shape_cast %274 : vector<1x1x32xf32> to vector<1x32xf32>
    %276 = vector.broadcast %275 : vector<1x32xf32> to vector<16x32xf32>
    %277 = arith.addf %273, %276 : vector<16x32xf32>
    %278 = arith.addf %178, %277 : vector<16x32xf32>
    %c1_183 = arith.constant 1 : index
    %c0_184 = arith.constant 0 : index
    %c0_185 = arith.constant 0 : index
    %279 = vector.load %arg12[%c1_183, %c0_184, %c0_185] : memref<2x1x32xf32, #tpu.memory_space<vmem>>, vector<1x1x32xf32>
    %280 = vector.shape_cast %279 : vector<1x1x32xf32> to vector<1x32xf32>
    %c1_186 = arith.constant 1 : index
    %c0_187 = arith.constant 0 : index
    %c0_188 = arith.constant 0 : index
    %281 = vector.load %arg13[%c1_186, %c0_187, %c0_188] : memref<2x1x32xf32, #tpu.memory_space<vmem>>, vector<1x1x32xf32>
    %282 = vector.shape_cast %281 : vector<1x1x32xf32> to vector<1x32xf32>
    %cst_189 = arith.constant dense<0.000000e+00> : vector<16xf32>
    %283 = vector.multi_reduction <add>, %278, %cst_189 [1] : vector<16x32xf32> to vector<16xf32>
    %284 = vector.shape_cast %283 : vector<16xf32> to vector<16x1xf32>
    %cst_190 = arith.constant 3.200000e+01 : f32
    %285 = vector.broadcast %cst_190 : f32 to vector<16x1xf32>
    %286 = arith.divf %284, %285 : vector<16x1xf32>
    %287 = vector.broadcast %286 : vector<16x1xf32> to vector<16x32xf32>
    %288 = arith.subf %278, %287 : vector<16x32xf32>
    %289 = arith.mulf %288, %288 : vector<16x32xf32>
    %cst_191 = arith.constant dense<0.000000e+00> : vector<16xf32>
    %290 = vector.multi_reduction <add>, %289, %cst_191 [1] : vector<16x32xf32> to vector<16xf32>
    %291 = vector.shape_cast %290 : vector<16xf32> to vector<16x1xf32>
    %cst_192 = arith.constant 3.200000e+01 : f32
    %292 = vector.broadcast %cst_192 : f32 to vector<16x1xf32>
    %293 = arith.divf %291, %292 : vector<16x1xf32>
    %294 = vector.broadcast %286 : vector<16x1xf32> to vector<16x32xf32>
    %295 = arith.subf %278, %294 : vector<16x32xf32>
    %cst_193 = arith.constant 9.99999974E-6 : f32
    %296 = vector.broadcast %cst_193 : f32 to vector<16x1xf32>
    %297 = arith.addf %293, %296 : vector<16x1xf32>
    %298 = math.rsqrt %297 : vector<16x1xf32>
    %299 = vector.broadcast %298 : vector<16x1xf32> to vector<16x32xf32>
    %300 = arith.mulf %295, %299 : vector<16x32xf32>
    %301 = vector.broadcast %280 : vector<1x32xf32> to vector<16x32xf32>
    %302 = arith.mulf %300, %301 : vector<16x32xf32>
    %303 = vector.broadcast %282 : vector<1x32xf32> to vector<16x32xf32>
    %304 = arith.addf %302, %303 : vector<16x32xf32>
    %c1_194 = arith.constant 1 : index
    %c0_195 = arith.constant 0 : index
    %c0_196 = arith.constant 0 : index
    %305 = vector.load %arg16[%c1_194, %c0_195, %c0_196] : memref<2x32x64xf32, #tpu.memory_space<vmem>>, vector<1x32x64xf32>
    %306 = vector.shape_cast %305 : vector<1x32x64xf32> to vector<32x64xf32>
    %307 = arith.truncf %304 : vector<16x32xf32> to vector<16x32xbf16>
    %308 = arith.truncf %306 : vector<32x64xf32> to vector<32x64xbf16>
    %cst_197 = arith.constant dense<0.000000e+00> : vector<16x64xf32>
    %309 = tpu.matmul %307, %308, %cst_197 {dimension_numbers = #tpu.dot_dimension_numbers<[1], [0], [0], [1], [0, 0, 1, 1], [], []>} : vector<16x32xbf16>, vector<32x64xbf16>, vector<16x64xf32> -> vector<16x64xf32>
    %c1_198 = arith.constant 1 : index
    %c0_199 = arith.constant 0 : index
    %c0_200 = arith.constant 0 : index
    %310 = vector.load %arg17[%c1_198, %c0_199, %c0_200] : memref<2x1x64xf32, #tpu.memory_space<vmem>>, vector<1x1x64xf32>
    %311 = vector.shape_cast %310 : vector<1x1x64xf32> to vector<1x64xf32>
    %312 = vector.broadcast %311 : vector<1x64xf32> to vector<16x64xf32>
    %313 = arith.addf %309, %312 : vector<16x64xf32>
    %cst_201 = arith.constant 0.000000e+00 : f32
    %314 = vector.broadcast %cst_201 : f32 to vector<16x64xf32>
    %315 = arith.maximumf %313, %314 : vector<16x64xf32>
    %c1_202 = arith.constant 1 : index
    %c0_203 = arith.constant 0 : index
    %c0_204 = arith.constant 0 : index
    %316 = vector.load %arg18[%c1_202, %c0_203, %c0_204] : memref<2x64x32xf32, #tpu.memory_space<vmem>>, vector<1x64x32xf32>
    %317 = vector.shape_cast %316 : vector<1x64x32xf32> to vector<64x32xf32>
    %318 = arith.truncf %315 : vector<16x64xf32> to vector<16x64xbf16>
    %319 = arith.truncf %317 : vector<64x32xf32> to vector<64x32xbf16>
    %cst_205 = arith.constant dense<0.000000e+00> : vector<16x32xf32>
    %320 = tpu.matmul %318, %319, %cst_205 {dimension_numbers = #tpu.dot_dimension_numbers<[1], [0], [0], [1], [0, 0, 1, 1], [], []>} : vector<16x64xbf16>, vector<64x32xbf16>, vector<16x32xf32> -> vector<16x32xf32>
    %c1_206 = arith.constant 1 : index
    %c0_207 = arith.constant 0 : index
    %c0_208 = arith.constant 0 : index
    %321 = vector.load %arg19[%c1_206, %c0_207, %c0_208] : memref<2x1x32xf32, #tpu.memory_space<vmem>>, vector<1x1x32xf32>
    %322 = vector.shape_cast %321 : vector<1x1x32xf32> to vector<1x32xf32>
    %323 = vector.broadcast %322 : vector<1x32xf32> to vector<16x32xf32>
    %324 = arith.addf %320, %323 : vector<16x32xf32>
    %325 = arith.addf %304, %324 : vector<16x32xf32>
    %c1_209 = arith.constant 1 : index
    %c0_210 = arith.constant 0 : index
    %c0_211 = arith.constant 0 : index
    %326 = vector.load %arg14[%c1_209, %c0_210, %c0_211] : memref<2x1x32xf32, #tpu.memory_space<vmem>>, vector<1x1x32xf32>
    %327 = vector.shape_cast %326 : vector<1x1x32xf32> to vector<1x32xf32>
    %c1_212 = arith.constant 1 : index
    %c0_213 = arith.constant 0 : index
    %c0_214 = arith.constant 0 : index
    %328 = vector.load %arg15[%c1_212, %c0_213, %c0_214] : memref<2x1x32xf32, #tpu.memory_space<vmem>>, vector<1x1x32xf32>
    %329 = vector.shape_cast %328 : vector<1x1x32xf32> to vector<1x32xf32>
    %cst_215 = arith.constant dense<0.000000e+00> : vector<16xf32>
    %330 = vector.multi_reduction <add>, %325, %cst_215 [1] : vector<16x32xf32> to vector<16xf32>
    %331 = vector.shape_cast %330 : vector<16xf32> to vector<16x1xf32>
    %cst_216 = arith.constant 3.200000e+01 : f32
    %332 = vector.broadcast %cst_216 : f32 to vector<16x1xf32>
    %333 = arith.divf %331, %332 : vector<16x1xf32>
    %334 = vector.broadcast %333 : vector<16x1xf32> to vector<16x32xf32>
    %335 = arith.subf %325, %334 : vector<16x32xf32>
    %336 = arith.mulf %335, %335 : vector<16x32xf32>
    %cst_217 = arith.constant dense<0.000000e+00> : vector<16xf32>
    %337 = vector.multi_reduction <add>, %336, %cst_217 [1] : vector<16x32xf32> to vector<16xf32>
    %338 = vector.shape_cast %337 : vector<16xf32> to vector<16x1xf32>
    %cst_218 = arith.constant 3.200000e+01 : f32
    %339 = vector.broadcast %cst_218 : f32 to vector<16x1xf32>
    %340 = arith.divf %338, %339 : vector<16x1xf32>
    %341 = vector.broadcast %333 : vector<16x1xf32> to vector<16x32xf32>
    %342 = arith.subf %325, %341 : vector<16x32xf32>
    %cst_219 = arith.constant 9.99999974E-6 : f32
    %343 = vector.broadcast %cst_219 : f32 to vector<16x1xf32>
    %344 = arith.addf %340, %343 : vector<16x1xf32>
    %345 = math.rsqrt %344 : vector<16x1xf32>
    %346 = vector.broadcast %345 : vector<16x1xf32> to vector<16x32xf32>
    %347 = arith.mulf %342, %346 : vector<16x32xf32>
    %348 = vector.broadcast %327 : vector<1x32xf32> to vector<16x32xf32>
    %349 = arith.mulf %347, %348 : vector<16x32xf32>
    %350 = vector.broadcast %329 : vector<1x32xf32> to vector<16x32xf32>
    %351 = arith.addf %349, %350 : vector<16x32xf32>
    %c0_220 = arith.constant 0 : index
    %c0_221 = arith.constant 0 : index
    %352 = vector.load %arg20[%c0_220, %c0_221] : memref<32x128xf32, #tpu.memory_space<vmem>>, vector<32x128xf32>
    %353 = arith.truncf %351 : vector<16x32xf32> to vector<16x32xbf16>
    %354 = arith.truncf %352 : vector<32x128xf32> to vector<32x128xbf16>
    %cst_222 = arith.constant dense<0.000000e+00> : vector<16x128xf32>
    %355 = tpu.matmul %353, %354, %cst_222 {dimension_numbers = #tpu.dot_dimension_numbers<[1], [0], [0], [1], [0, 0, 1, 1], [], []>} : vector<16x32xbf16>, vector<32x128xbf16>, vector<16x128xf32> -> vector<16x128xf32>
    %c0_223 = arith.constant 0 : index
    %c0_224 = arith.constant 0 : index
    %356 = vector.load %arg21[%c0_223, %c0_224] : memref<1x128xf32, #tpu.memory_space<vmem>>, vector<1x128xf32>
    %357 = vector.broadcast %356 : vector<1x128xf32> to vector<16x128xf32>
    %358 = arith.addf %355, %357 : vector<16x128xf32>
    %cst_225 = arith.constant dense<0xFF800000> : vector<16xf32>
    %359 = vector.multi_reduction <maximumf>, %358, %cst_225 [1] : vector<16x128xf32> to vector<16xf32>
    %360 = vector.shape_cast %359 : vector<16xf32> to vector<16x1xf32>
    %361 = vector.broadcast %360 : vector<16x1xf32> to vector<16x128xf32>
    %362 = arith.subf %358, %361 : vector<16x128xf32>
    %363 = math.exp %362 : vector<16x128xf32>
    %cst_226 = arith.constant dense<0.000000e+00> : vector<16xf32>
    %364 = vector.multi_reduction <add>, %363, %cst_226 [1] : vector<16x128xf32> to vector<16xf32>
    %365 = vector.shape_cast %364 : vector<16xf32> to vector<16x1xf32>
    %366 = math.log %365 : vector<16x1xf32>
    %367 = vector.broadcast %366 : vector<16x1xf32> to vector<16x128xf32>
    %368 = arith.subf %362, %367 : vector<16x128xf32>
    %c0_227 = arith.constant 0 : index
    %c0_228 = arith.constant 0 : index
    %369 = vector.load %arg22[%c0_227, %c0_228] : memref<16x128xf32, #tpu.memory_space<vmem>>, vector<16x128xf32>
    tpu.vector_store %arg22[%c0_227, %c0_228], %368 {strides = array<i32>} : memref<16x128xf32, #tpu.memory_space<vmem>>, vector<16x128xf32>,
    return
  }
  func.func @transform_0(%arg0: i32) -> (i32, i32) {
    %c0_i32 = arith.constant 0 : i32
    %c0_i32_0 = arith.constant 0 : i32
    %c0_i32_1 = arith.constant 0 : i32
    return %c0_i32, %c0_i32_0 : i32, i32
  }
  func.func @transform_1(%arg0: i32) -> (i32, i32) {
    %c0_i32 = arith.constant 0 : i32
    %c0_i32_0 = arith.constant 0 : i32
    %c0_i32_1 = arith.constant 0 : i32
    return %c0_i32, %c0_i32_0 : i32, i32
  }
  func.func @transform_2(%arg0: i32) -> (i32, i32) {
    %c0_i32 = arith.constant 0 : i32
    %c0_i32_0 = arith.constant 0 : i32
    %c0_i32_1 = arith.constant 0 : i32
    return %c0_i32, %c0_i32_0 : i32, i32
  }
  func.func @transform_3(%arg0: i32) -> (i32, i32, i32, i32) {
    %c0_i32 = arith.constant 0 : i32
    %c0_i32_0 = arith.constant 0 : i32
    %c0_i32_1 = arith.constant 0 : i32
    %c0_i32_2 = arith.constant 0 : i32
    %c0_i32_3 = arith.constant 0 : i32
    return %c0_i32, %c0_i32_0, %c0_i32_1, %c0_i32_2 : i32, i32, i32, i32
  }
  func.func @transform_4(%arg0: i32) -> (i32, i32, i32, i32) {
    %c0_i32 = arith.constant 0 : i32
    %c0_i32_0 = arith.constant 0 : i32
    %c0_i32_1 = arith.constant 0 : i32
    %c0_i32_2 = arith.constant 0 : i32
    %c0_i32_3 = arith.constant 0 : i32
    return %c0_i32, %c0_i32_0, %c0_i32_1, %c0_i32_2 : i32, i32, i32, i32
  }
  func.func @transform_5(%arg0: i32) -> (i32, i32, i32, i32) {
    %c0_i32 = arith.constant 0 : i32
    %c0_i32_0 = arith.constant 0 : i32
    %c0_i32_1 = arith.constant 0 : i32
    %c0_i32_2 = arith.constant 0 : i32
    %c0_i32_3 = arith.constant 0 : i32
    return %c0_i32, %c0_i32_0, %c0_i32_1, %c0_i32_2 : i32, i32, i32, i32
  }
  func.func @transform_6(%arg0: i32) -> (i32, i32, i32, i32) {
    %c0_i32 = arith.constant 0 : i32
    %c0_i32_0 = arith.constant 0 : i32
    %c0_i32_1 = arith.constant 0 : i32
    %c0_i32_2 = arith.constant 0 : i32
    %c0_i32_3 = arith.constant 0 : i32
    return %c0_i32, %c0_i32_0, %c0_i32_1, %c0_i32_2 : i32, i32, i32, i32
  }
  func.func @transform_7(%arg0: i32) -> (i32, i32, i32, i32) {
    %c0_i32 = arith.constant 0 : i32
    %c0_i32_0 = arith.constant 0 : i32
    %c0_i32_1 = arith.constant 0 : i32
    %c0_i32_2 = arith.constant 0 : i32
    %c0_i32_3 = arith.constant 0 : i32
    return %c0_i32, %c0_i32_0, %c0_i32_1, %c0_i32_2 : i32, i32, i32, i32
  }
  func.func @transform_8(%arg0: i32) -> (i32, i32, i32, i32) {
    %c0_i32 = arith.constant 0 : i32
    %c0_i32_0 = arith.constant 0 : i32
    %c0_i32_1 = arith.constant 0 : i32
    %c0_i32_2 = arith.constant 0 : i32
    %c0_i32_3 = arith.constant 0 : i32
    return %c0_i32, %c0_i32_0, %c0_i32_1, %c0_i32_2 : i32, i32, i32, i32
  }
  func.func @transform_9(%arg0: i32) -> (i32, i32, i32) {
    %c0_i32 = arith.constant 0 : i32
    %c0_i32_0 = arith.constant 0 : i32
    %c0_i32_1 = arith.constant 0 : i32
    %c0_i32_2 = arith.constant 0 : i32
    return %c0_i32, %c0_i32_0, %c0_i32_1 : i32, i32, i32
  }
  func.func @transform_10(%arg0: i32) -> (i32, i32, i32) {
    %c0_i32 = arith.constant 0 : i32
    %c0_i32_0 = arith.constant 0 : i32
    %c0_i32_1 = arith.constant 0 : i32
    %c0_i32_2 = arith.constant 0 : i32
    return %c0_i32, %c0_i32_0, %c0_i32_1 : i32, i32, i32
  }
  func.func @transform_11(%arg0: i32) -> (i32, i32, i32) {
    %c0_i32 = arith.constant 0 : i32
    %c0_i32_0 = arith.constant 0 : i32
    %c0_i32_1 = arith.constant 0 : i32
    %c0_i32_2 = arith.constant 0 : i32
    return %c0_i32, %c0_i32_0, %c0_i32_1 : i32, i32, i32
  }
  func.func @transform_12(%arg0: i32) -> (i32, i32, i32) {
    %c0_i32 = arith.constant 0 : i32
    %c0_i32_0 = arith.constant 0 : i32
    %c0_i32_1 = arith.constant 0 : i32
    %c0_i32_2 = arith.constant 0 : i32
    return %c0_i32, %c0_i32_0, %c0_i32_1 : i32, i32, i32
  }
  func.func @transform_13(%arg0: i32) -> (i32, i32, i32) {
    %c0_i32 = arith.constant 0 : i32
    %c0_i32_0 = arith.constant 0 : i32
    %c0_i32_1 = arith.constant 0 : i32
    %c0_i32_2 = arith.constant 0 : i32
    return %c0_i32, %c0_i32_0, %c0_i32_1 : i32, i32, i32
  }
  func.func @transform_14(%arg0: i32) -> (i32, i32, i32) {
    %c0_i32 = arith.constant 0 : i32
    %c0_i32_0 = arith.constant 0 : i32
    %c0_i32_1 = arith.constant 0 : i32
    %c0_i32_2 = arith.constant 0 : i32
    return %c0_i32, %c0_i32_0, %c0_i32_1 : i32, i32, i32
  }
  func.func @transform_15(%arg0: i32) -> (i32, i32, i32) {
    %c0_i32 = arith.constant 0 : i32
    %c0_i32_0 = arith.constant 0 : i32
    %c0_i32_1 = arith.constant 0 : i32
    %c0_i32_2 = arith.constant 0 : i32
    return %c0_i32, %c0_i32_0, %c0_i32_1 : i32, i32, i32
  }
  func.func @transform_16(%arg0: i32) -> (i32, i32, i32) {
    %c0_i32 = arith.constant 0 : i32
    %c0_i32_0 = arith.constant 0 : i32
    %c0_i32_1 = arith.constant 0 : i32
    %c0_i32_2 = arith.constant 0 : i32
    return %c0_i32, %c0_i32_0, %c0_i32_1 : i32, i32, i32
  }
  func.func @transform_17(%arg0: i32) -> (i32, i32, i32) {
    %c0_i32 = arith.constant 0 : i32
    %c0_i32_0 = arith.constant 0 : i32
    %c0_i32_1 = arith.constant 0 : i32
    %c0_i32_2 = arith.constant 0 : i32
    return %c0_i32, %c0_i32_0, %c0_i32_1 : i32, i32, i32
  }
  func.func @transform_18(%arg0: i32) -> (i32, i32, i32) {
    %c0_i32 = arith.constant 0 : i32
    %c0_i32_0 = arith.constant 0 : i32
    %c0_i32_1 = arith.constant 0 : i32
    %c0_i32_2 = arith.constant 0 : i32
    return %c0_i32, %c0_i32_0, %c0_i32_1 : i32, i32, i32
  }
  func.func @transform_19(%arg0: i32) -> (i32, i32) {
    %c0_i32 = arith.constant 0 : i32
    %c0_i32_0 = arith.constant 0 : i32
    %c0_i32_1 = arith.constant 0 : i32
    return %c0_i32, %c0_i32_0 : i32, i32
  }
  func.func @transform_20(%arg0: i32) -> (i32, i32) {
    %c0_i32 = arith.constant 0 : i32
    %c0_i32_0 = arith.constant 0 : i32
    %c0_i32_1 = arith.constant 0 : i32
    return %c0_i32, %c0_i32_0 : i32, i32
  }
  func.func @transform_21(%arg0: i32) -> (i32, i32) {
    %c0_i32 = arith.constant 0 : i32
    %c0_i32_0 = arith.constant 0 : i32
    %c0_i32_1 = arith.constant 0 : i32
    return %c0_i32, %c0_i32_0 : i32, i32
  }
}

</mosaic_0001>

<bundles_post_ra>
// kernel: transformer_forward.1
= control target key start
LH: loop header
LB: loop body
LE: loop exit
PB: predicated region body
PF: predicated region fallthrough
CT: control target
= control target key end

     0   :  { %vm90_vm0 = vcmask 261120   ;;  %vm190_vm1 = vcmask 130048   ;;  %vm577_vm9 = vcmask 523264   ;;  %s2081_s5 = inlined_call_operand.vmem [shape: f32[2,2,32,16], index: 5, kind: input, shape index: {}]   ;;  %s2082_s0 = inlined_call_operand.vmem [shape: f32[16,32], index: 0, kind: input, shape index: {}]   ;;  %s2083_s1 = inlined_call_operand.vmem [shape: f32[16,32], index: 1, kind: input, shape index: {}]   ;;  %s2084_s6 = inlined_call_operand.vmem [shape: f32[2,2,1,16], index: 6, kind: input, shape index: {}]   ;;  %s2085_s4 = inlined_call_operand.vmem [shape: f32[2,2,1,16], index: 4, kind: input, shape index: {}]   ;;  %s2086_s3 = inlined_call_operand.vmem [shape: f32[2,2,32,16], index: 3, kind: input, shape index: {}]   ;;  %s2087_s7 = inlined_call_operand.vmem [shape: f32[2,2,32,16], index: 7, kind: input, shape index: {}]   ;;  %s2088_s2 = inlined_call_operand.vmem [shape: f32[16,16], index: 2, kind: input, shape index: {}]   ;;  %s2089_s8 = inlined_call_operand.vmem [shape: f32[2,2,1,16], index: 8, kind: input, shape index: {}]   ;;  %s2090_s9 = inlined_call_operand.vmem [shape: f32[2,32,32], index: 9, kind: input, shape index: {}]   ;;  %s2091_s10 = inlined_call_operand.vmem [shape: f32[2,1,32], index: 10, kind: input, shape index: {}]   ;;  %s2092_s11 = inlined_call_operand.vmem [shape: f32[2,1,32], index: 11, kind: input, shape index: {}]   ;;  %s2093_s12 = inlined_call_operand.vmem [shape: f32[2,1,32], index: 12, kind: input, shape index: {}]   ;;  %s2094_s16 = inlined_call_operand.vmem [shape: f32[2,1,64], index: 16, kind: input, shape index: {}]   ;;  %s2095_s15 = inlined_call_operand.vmem [shape: f32[2,32,64], index: 15, kind: input, shape index: {}]   ;;  %s2096_s18 = inlined_call_operand.vmem [shape: f32[2,1,32], index: 18, kind: input, shape index: {}]   ;;  %s2097_s17 = inlined_call_operand.vmem [shape: f32[2,64,32], index: 17, kind: input, shape index: {}]   ;;  %s2098_s13 = inlined_call_operand.vmem [shape: f32[2,1,32], index: 13, kind: input, shape index: {}]   ;;  %s2099_s14 = inlined_call_operand.vmem [shape: f32[2,1,32], index: 14, kind: input, shape index: {}]   ;;  %s2100_s20 = inlined_call_operand.vmem [shape: f32[1,128], index: 20, kind: input, shape index: {}]   ;;  %s2101_s19 = inlined_call_operand.vmem [shape: f32[32,128], index: 19, kind: input, shape index: {}]   ;;  %s2102_s21 = inlined_call_operand.vmem [shape: f32[16,128], index: 21, kind: output, shape index: {}]  }
   0x1   :  { %2109 = sst [smem:[#allocation2_spill]] %s2081_s5  ;;  %v134_v43 = vld [vmem:[%s2087_s7 + $0x10] sm:$0xff]  ;;  %v135_v44 = vld [vmem:[%s2087_s7 + $0x18] sm:$0xff]  ;;  %v132_v46 = vld [vmem:[%s2087_s7] sm:$0xff]  ;;  %s1480_s5 = smov 16  }
   0x2   :  { %2110 = sst [smem:[#allocation3_spill]] %s2082_s0  ;;  %v137_v45 = vpack.c.bf16 %v135_v44, %v134_v43  ;;  %v133_v47 = vld [vmem:[%s2087_s7 + $0x8] sm:$0xff]  ;;  %v1681_v53 = vld [vmem:[%s2088_s2] sm:$0xff] }
   0x3   :  { %2111 = sst [smem:[#allocation4_spill]] %s2083_s1  ;;  %v136_v49 = vpack.c.bf16 %v133_v47, %v132_v46  ;;  %v1688_v58 = vld [vmem:[%s2088_s2 + $0x8] sm:$0xff] }
   0x4   :  { %2112 = sst [smem:[#allocation5_spill]] %s2084_s6  ;;  %148 = vmatpush.bf16.msra.mxu2 %v137_v45  ;;  %v1305_v43 = vld [vmem:[%s2087_s7 + $0x28] sm:$0xff] }
   0x5   :  { %2113 = sst [smem:[#allocation6_spill]] %s2085_s4 }
   0x6   :  { %2114 = sst [smem:[#allocation7_spill]] %s2086_s3 }
   0x7   :  { %s2115_s26 = sld [smem:[#allocation2_spill]] }
   0x8   :  { %s2116_s22 = sld [smem:[#allocation3_spill]]  ;;  %149 = vmatpush.bf16.msra.mxu2 %v136_v49 }
   0x9   :  { %s2117_s25 = sld [smem:[#allocation4_spill]] }
   0xa   :  { %s2118_s29 = sld [smem:[#allocation7_spill]] }
   0xb   :  { %s2120_s24 = sld [smem:[#allocation6_spill]] }
   0xd   :  { %v110_v0 = vld [vmem:[%s2115_s26 + $0x10] sm:$0xff]  ;;  %v111_v1 = vld [vmem:[%s2115_s26 + $0x18] sm:$0xff]  ;;  %v108_v2 = vld [vmem:[%s2115_s26] sm:$0xff] }
   0xe   :  { %v113_v3 = vpack.c.bf16 %v111_v1, %v110_v0  ;;  %v109_v4 = vld [vmem:[%s2115_s26 + $0x8] sm:$0xff]  ;;  %v69_v5 = vld [vmem:[%s2116_s22] sm:$0xff]  ;;  %v1300_v26 = vld [vmem:[%s2115_s26 + $0x30] sm:$0xff] }
   0xf   :  { %v70_v6 = vld [vmem:[%s2116_s22 + $0x8] sm:$0xff]  ;;  %v71_v7 = vmul.f32 5.656854, %v69_v5  ;;  %v73_v9 = vld [vmem:[%s2117_s25] sm:$0xff]  ;;  %v112_v11 = vpack.c.bf16 %v109_v4, %v108_v2  ;;  %v1301_v27 = vld [vmem:[%s2115_s26 + $0x38] sm:$0xff] }
  0x10   :  { %v72_v8 = vmul.f32 5.656854, %v70_v6  ;;  %v74_v10 = vld [vmem:[%s2117_s25 + $0x8] sm:$0xff]  ;;  %124 = vmatpush.bf16.msra.mxu1 %v113_v3  ;;  %v82_v15 = vld [vmem:[%s2118_s29 + $0x10] sm:$0xff]  ;;  %v83_v16 = vld [vmem:[%s2118_s29 + $0x18] sm:$0xff]  ;;  %s2119_s25 = sld [smem:[#allocation5_spill]]  ;;  %v285_v29 = vpack.c.bf16 %v1301_v27, %v1300_v26 }
  0x11   :  { %v1616_v12 = vadd.f32 %v73_v9, %v71_v7  ;;  %v80_v17 = vld [vmem:[%s2118_s29] sm:$0xff]  ;;  %v85_v18 = vpack.c.bf16 %v83_v16, %v82_v15  ;;  %v81_v19 = vld [vmem:[%s2118_s29 + $0x8] sm:$0xff]  ;;  %v1294_v62 = vld [vmem:[%s2118_s29 + $0x30] sm:$0xff] }
  0x12   :  { %v1618_v13 = vadd.f32 %v74_v10, %v72_v8  ;;  %v84_v20 = vpack.c.bf16 %v81_v19, %v80_v17  ;;  %v1298_v28 = vld [vmem:[%s2115_s26 + $0x20] sm:$0xff]  ;;  %v1299_v30 = vld [vmem:[%s2115_s26 + $0x28] sm:$0xff]  ;;  %v1295_v63 = vld [vmem:[%s2118_s29 + $0x38] sm:$0xff] }
  0x13   :  { %100 = vmatpush.bf16.msra.mxu0 %v85_v18  ;;  %v284_v31 = vpack.c.bf16 %v1299_v30, %v1298_v28  ;;  %v1396_v34 = vld [vmem:[%s2120_s24] ss:$0 sm:$0xff]  ;;  %v259_v0 = vpack.c.bf16 %v1295_v63, %v1294_v62  ;;  %v1293_v2 = vld [vmem:[%s2118_s29 + $0x28] sm:$0xff] }
  0x14   :  { %v1622_v14 = vpack.c.bf16 %v1618_v13, %v1616_v12  ;;  %125 = vmatpush.bf16.msra.mxu1 %v112_v11  ;;  %v1292_v1 = vld [vmem:[%s2118_s29 + $0x20] sm:$0xff] }
  0x15   :  { %v258_v3 = vpack.c.bf16 %v1293_v2, %v1292_v1  ;;  %v1398_v18 = vld [vmem:[%s2089_s8] ss:$0 sm:$0xff] }
  0x16   :  { %v1395_v21 = vld [vmem:[%s2119_s25] ss:$0 sm:$0xff]  ;;  %v1397_v41 = vld [vmem:[%s2119_s25 + $0x1] ss:$0 sm:$0xff]  ;;  %1289 = vmatmul.msk.bf16.vlgmr.msra.gmra.mxu2 %vm90_vm0, %v1622_v14 }
  0x17   :  { %1288 = vmatmul.msk.bf16.vlgmr.msra.gmra.mxu1 %vm90_vm0, %v1622_v14  ;;  %101 = vmatpush.bf16.msra.mxu0 %v84_v20 }
  0x18   :  { %297 = vmatpush.bf16.msrb.mxu1 %v285_v29 }
  0x1a   :  { %1287 = vmatmul.msk.bf16.vlgmr.msra.gmra.mxu0 %vm90_vm0, %v1622_v14 }
  0x1b   :  { %271 = vmatpush.bf16.msrb.mxu0 %v259_v0 }
  0x1c   :  { %298 = vmatpush.bf16.msrb.mxu1 %v284_v31 }
  0x1f   :  { %272 = vmatpush.bf16.msrb.mxu0 %v258_v3  ;;  %v1400_v3 = vld [vmem:[%s2089_s8 + $0x1] ss:$0 sm:$0xff] }
  0x27   :  { %1303 = vmatmul.msk.bf16.vlgmr.msrb.gmra.mxu1 %vm90_vm0, %v1622_v14 }
  0x2a   :  { %1297 = vmatmul.msk.bf16.vlgmr.msrb.gmra.mxu0 %vm90_vm0, %v1622_v14 }
  0x94   :  { %v127_v22 = vpop.f32.mrf.mxu1 }
  0x95   :  { %v128_v23 = vadd.f32 %v1395_v21, %v127_v22 }
  0x97   :  { %156 = vxpose.xlu0.b32.start [1/2] (short) (narrow) %v128_v23, 16  ;;  %v103_v32 = vpop.f32.mrf.mxu0 }
  0x98   :  { %v104_v36 = vadd.f32 %v1396_v34, %v103_v32 }
  0x99   :  { %v151_v17 = vpop.f32.mrf.mxu2 }
  0x9a   :  { %v152_v19 = vadd.f32 %v1398_v18, %v151_v17 }
  0x9c   :  { %v129_v24 = vpop.f32.mrf.mxu1 }
  0x9d   :  { %v130_v25 = vadd.f32 %v1395_v21, %v129_v24 }
  0x9f   :  { %157 = vxpose.xlu0.b32.end [2/2] (short) (narrow) %v130_v25, 16  ;;  %v105_v35 = vpop.f32.mrf.mxu0 }
  0xa0   :  { %v106_v37 = vadd.f32 %v1396_v34, %v105_v35  ;;  %v1399_v34 = vld [vmem:[%s2120_s24 + $0x1] ss:$0 sm:$0xff] }
  0xa1   :  { %v153_v20 = vpop.f32.mrf.mxu2 }
  0xa2   :  { %v188_v40 = vpack.c.bf16 %v106_v37, %v104_v36  ;;  %v154_v21 = vadd.f32 %v1398_v18, %v153_v20  ;;  %v439_v18 = vld [vmem:[%s2090_s9 + $0x10] sm:$0xff] }
  0xa4   :  { %v300_v42 = vpop.f32.mrf.mxu1  ;;  %v235_v22 = vpack.c.bf16 %v154_v21, %v152_v19  ;;  %v440_v19 = vld [vmem:[%s2090_s9 + $0x18] sm:$0xff] }
  0xa5   :  { %v301_v48 = vadd.f32 %v1397_v41, %v300_v42  ;;  %v443_v20 = vpack.c.bf16 %v440_v19, %v439_v18 }
  0xa7   :  { %331 = vxpose.xlu0.b32.start [1/2] (short) (narrow) %v301_v48, 16  ;;  %v274_v32 = vpop.f32.mrf.mxu0  ;;  %457 = vmatpush.bf16.msra.mxu1 %v443_v20 }
  0xa8   :  { %v275_v36 = vadd.f32 %v1399_v34, %v274_v32 }
  0xac   :  { %v302_v50 = vpop.f32.mrf.mxu1 }
  0xad   :  { %v303_v51 = vadd.f32 %v1397_v41, %v302_v50  ;;  %v1304_v41 = vld [vmem:[%s2087_s7 + $0x20] sm:$0xff] }
  0xae   :  { %v310_v45 = vpack.c.bf16 %v1305_v43, %v1304_v41 }
  0xaf   :  { %332 = vxpose.xlu0.b32.end [2/2] (short) (narrow) %v303_v51, 16  ;;  %v276_v35 = vpop.f32.mrf.mxu0 }
  0xb0   :  { %v277_v37 = vadd.f32 %v1399_v34, %v276_v35 }
 0x13b   :  { %v172_v33 = vpop.trf.xlu0 }
 0x143   :  { %v173_v38 = vpop.trf.xlu0 }
 0x144   :  { %v189_v39 = vpack.c.bf16 %v173_v38, %v172_v33  ;;  %v363_v38 = vpack.c.bf16 %v277_v37, %v275_v36 }
 0x146   :  { %201 = vmatpush.bf16.msra.mxu3 %v189_v39  ;;  %v1306_v39 = vld [vmem:[%s2087_s7 + $0x30] sm:$0xff] }
 0x149   :  { %1290 = vmatmul.msk.bf16.vlgmr.msra.gmra.mxu3 %vm190_vm1, %v188_v40  ;;  %v1307_v40 = vld [vmem:[%s2087_s7 + $0x38] sm:$0xff] }
 0x14a   :  { %246 = vmatpush.bf16.msrb.mxu3 %v235_v22  ;;  %v311_v42 = vpack.c.bf16 %v1307_v40, %v1306_v39 }
 0x14b   :  { %v347_v23 = vpop.trf.xlu0 }
 0x14c   :  { %323 = vmatpush.bf16.msrb.mxu2 %v311_v42  ;;  %v1481_v42 = vmov 32.0  }
 0x150   :  { %324 = vmatpush.bf16.msrb.mxu2 %v310_v45 }
 0x153   :  { %v348_v24 = vpop.trf.xlu0  ;;  %1309 = vmatmul.msk.bf16.vlgmr.msrb.gmra.mxu2 %vm90_vm0, %v1622_v14 }
 0x154   :  { %v364_v25 = vpack.c.bf16 %v348_v24, %v347_v23  ;;  %v437_v24 = vld [vmem:[%s2090_s9] sm:$0xff] }
 0x156   :  { %375 = vmatpush.bf16.msra.mxu3 %v364_v25  ;;  %v438_v25 = vld [vmem:[%s2090_s9 + $0x8] sm:$0xff] }
 0x1cc   :  { %v203_v52 = vpop.f32.mrf.mxu3 }
 0x1cd   :  { %v208_v54 = vmul.f32 0.25, %v203_v52 }
 0x1cf   :  { %v210_v55 = vadd.f32 %v208_v54, %v1681_v53 }
 0x1d1   :  { %v212_v56 = vsel %vm190_vm1, %v210_v55, -inf }
 0x1d2   :  { %213 = vmax.xlane.f32.xlu1 %v212_v56 }
 0x1d4   :  { %v205_v57 = vpop.f32.mrf.mxu3 }
 0x1d5   :  { %v209_v59 = vmul.f32 0.25, %v205_v57 }
 0x1d6   :  { %v326_v2 = vpop.f32.mrf.mxu2 }
 0x1d7   :  { %v211_v60 = vadd.f32 %v209_v59, %v1688_v58 }
 0x1d9   :  { %v215_v61 = vsel %vm190_vm1, %v211_v60, -inf }
 0x1da   :  { %216 = vmax.xlane.f32.xlu1 %v215_v61 }
 0x245   :  { %v214_v4 = vpop.xlane.xlu1 %213 }
 0x246   :  { %v218_v5 = vsub.f32 %v210_v55, %v214_v4  ;;  %v327_v4 = vadd.f32 %v1400_v3, %v326_v2 }
 0x248   :  { %v220_v6 = vmul.f32 1.442695, %v218_v5  ;;  %v328_v5 = vpop.f32.mrf.mxu2 }
 0x24a   :  { %1422 = vpow2.f32 %v220_v6  ;;  %v329_v6 = vadd.f32 %v1400_v3, %v328_v5 }
 0x24d   :  { %v217_v7 = vpop.xlane.xlu1 %216 }
 0x24e   :  { %v219_v8 = vsub.f32 %v211_v60, %v217_v7  ;;  %v409_v7 = vpack.c.bf16 %v329_v6, %v327_v4 }
 0x250   :  { %v1423_v9 = vpop.eup %1422  ;;  %v222_v10 = vmul.f32 1.442695, %v219_v8  ;;  %420 = vmatpush.bf16.msra.mxu0 %v409_v7 }
 0x251   :  { %v224_v11 = vsel %vm190_vm1, %v1423_v9, 0.0 }
 0x252   :  { %1424 = vpow2.f32 %v222_v10  ;;  %225 = vadd.xlane.f32.xlu2 %v224_v11 }
 0x258   :  { %v1425_v15 = vpop.eup %1424 }
 0x259   :  { %v227_v16 = vsel %vm190_vm1, %v1425_v15, 0.0 }
 0x25a   :  { %228 = vadd.xlane.f32.xlu2 %v227_v16 }
 0x2c5   :  { %v226_v26 = vpop.xlane.xlu2 %225 }
 0x2c6   :  { %1426 = vrcp.f32 %v226_v26  ;;  %v442_v26 = vpack.c.bf16 %v438_v25, %v437_v24  ;;  %v1403_v25 = vld [vmem:[%s2093_s12] ss:$0 sm:$0xff] }
 0x2c8   :  { %458 = vmatpush.bf16.msra.mxu1 %v442_v26 }
 0x2cc   :  { %v1427_v28 = vpop.eup %1426 }
 0x2cd   :  { %v229_v27 = vpop.xlane.xlu2 %228  ;;  %v232_v30 = vmul.f32 %v1427_v28, %v1423_v9 }
 0x2ce   :  { %1428 = vrcp.f32 %v229_v27 }
 0x2d4   :  { %v1429_v29 = vpop.eup %1428 }
 0x2d5   :  { %v233_v31 = vmul.f32 %v1429_v29, %v1425_v15 }
 0x2d7   :  { %v234_v33 = vpack.c.bf16 %v233_v31, %v232_v30 }
 0x2d9   :  { %1291 = vmatmul.msk.bf16.vlgmr.msrb.gmra.mxu3 %vm190_vm1, %v234_v33  ;;  %v1401_v33 = vld [vmem:[%s2091_s10] ss:$0 sm:$0xff] }
 0x2e9   :  { %1310 = vmatmul.msk.bf16.vlgmr.msra.gmra.mxu3 %vm190_vm1, %v363_v38 }
 0x35c   :  { %v1728_v44 = vpop.f32.mrf.mxu3 }
 0x364   :  { %v250_v46 = vpop.f32.mrf.mxu3 }
 0x36c   :  { %v377_v47 = vpop.f32.mrf.mxu3 }
 0x36d   :  { %v382_v48 = vmul.f32 0.25, %v377_v47 }
 0x36f   :  { %v384_v49 = vadd.f32 %v382_v48, %v1681_v53 }
 0x371   :  { %v386_v50 = vsel %vm190_vm1, %v384_v49, -inf }
 0x372   :  { %387 = vmax.xlane.f32.xlu1 %v386_v50 }
 0x374   :  { %v379_v51 = vpop.f32.mrf.mxu3 }
 0x375   :  { %v383_v52 = vmul.f32 0.25, %v379_v51 }
 0x377   :  { %v385_v54 = vadd.f32 %v383_v52, %v1688_v58 }
 0x379   :  { %v389_v55 = vsel %vm190_vm1, %v385_v54, -inf }
 0x37a   :  { %390 = vmax.xlane.f32.xlu2 %v389_v55 }
 0x3e5   :  { %v388_v56 = vpop.xlane.xlu1 %387 }
 0x3e6   :  { %v392_v57 = vsub.f32 %v384_v49, %v388_v56 }
 0x3e8   :  { %v394_v59 = vmul.f32 1.442695, %v392_v57 }
 0x3ea   :  { %1430 = vpow2.f32 %v394_v59  ;;  %v532_v59 = vld [vmem:[%s2095_s15 + $0x10] sm:$0xff] }
 0x3ed   :  { %v391_v60 = vpop.xlane.xlu2 %390 }
 0x3ee   :  { %v393_v14 = vsub.f32 %v385_v54, %v391_v60  ;;  %v533_v60 = vld [vmem:[%s2095_s15 + $0x18] sm:$0xff] }
 0x3f0   :  { %v1431_v61 = vpop.eup %1430  ;;  %v396_v62 = vmul.f32 1.442695, %v393_v14  ;;  %v536_v14 = vpack.c.bf16 %v533_v60, %v532_v59 }
 0x3f1   :  { %v398_v63 = vsel %vm190_vm1, %v1431_v61, 0.0 }
 0x3f2   :  { %1432 = vpow2.f32 %v396_v62  ;;  %399 = vadd.xlane.f32.xlu1 %v398_v63  ;;  %550 = vmatpush.bf16.msra.mxu2 %v536_v14  ;;  %v530_v63 = vld [vmem:[%s2095_s15] sm:$0xff] }
 0x3f8   :  { %v1433_v0 = vpop.eup %1432 }
 0x3f9   :  { %v401_v1 = vsel %vm190_vm1, %v1433_v0, 0.0 }
 0x3fa   :  { %402 = vadd.xlane.f32.xlu2 %v401_v1 }
 0x465   :  { %v400_v8 = vpop.xlane.xlu1 %399 }
 0x466   :  { %1434 = vrcp.f32 %v400_v8 }
 0x46c   :  { %v1435_v10 = vpop.eup %1434 }
 0x46d   :  { %v403_v9 = vpop.xlane.xlu2 %402  ;;  %v406_v15 = vmul.f32 %v1435_v10, %v1431_v61 }
 0x46e   :  { %1436 = vrcp.f32 %v403_v9 }
 0x46f   :  { %1438 = vrcp.f32 %v1481_v42  ;;  %v561_v42 = vld [vmem:[%s2097_s17 + $0x8] sm:$0xff] }
 0x474   :  { %v1437_v11 = vpop.eup %1436 }
 0x475   :  { %v407_v16 = vmul.f32 %v1437_v11, %v1433_v0  ;;  %v1439_v43 = vpop.eup %1438  ;;  %v531_v0 = vld [vmem:[%s2095_s15 + $0x8] sm:$0xff] }
 0x476   :  { %vm480_vm2 = vweird.f32 %v1439_v43  ;;  %v535_v1 = vpack.c.bf16 %v531_v0, %v530_v63 }
 0x477   :  { %v408_v17 = vpack.c.bf16 %v407_v16, %v406_v15 }
 0x478   :  { %551 = vmatpush.bf16.msra.mxu2 %v535_v1 }
 0x479   :  { %1311 = vmatmul.msk.bf16.vlgmr.msra.gmra.mxu0 %vm190_vm1, %v408_v17 }
 0x4f6   :  { %v422_v21 = vpop.f32.mrf.mxu0 }
 0x4fe   :  { %v424_v22 = vpop.f32.mrf.mxu0 }
 0x4ff   :  { %v1385_v23 = vpack.i.bf16 %v424_v22, %v422_v21  ;;  %v1402_v21 = vld [vmem:[%s2092_s11] ss:$0 sm:$0xff] }
 0x501   :  { %1386 = vrot.lane.b32.xlu0 %v1385_v23, %s1480_s5 }
 0x573   :  { %v1387_v27 = vpop.permute.xlu0 %1386 }
 0x574   :  { %v1389_v28 = vunpack.i.h.bf16 %v1387_v27  ;;  %v1388_v29 = vunpack.i.l.bf16 %v1387_v27 }
 0x576   :  { %v436_v30 = vsel %vm190_vm1, %v250_v46, %v1389_v28  ;;  %v435_v31 = vsel %vm190_vm1, %v1728_v44, %v1388_v29  ;;  %v476_v44 = vmul.f32 32.0, %v1439_v43 }
 0x577   :  { %v441_v32 = vpack.c.bf16 %v436_v30, %v435_v31 }
 0x578   :  { %v477_v45 = vsub.f32 1.0, %v476_v44 }
 0x579   :  { %1312 = vmatmul.msk.bf16.vlgmr.msra.gmra.mxu1 %vm90_vm0, %v441_v32  ;;  %v566_v32 = vld [vmem:[%s2097_s17 + $0x30] sm:$0xff] }
 0x57a   :  { %v478_v46 = vmul.f32 %v1439_v43, %v477_v45  ;;  %v1404_v45 = vld [vmem:[%s2094_s16] ss:$0 sm:$0xff] }
 0x57c   :  { %v479_v47 = vadd.f32 %v1439_v43, %v478_v46 }
 0x57e   :  { %v1766_v48 = vsel %vm480_vm2, %v1439_v43, %v479_v47 }
 0x5f6   :  { %v460_v34 = vpop.f32.mrf.mxu1 }
 0x5f7   :  { %v461_v35 = vadd.f32 %v1401_v33, %v460_v34 }
 0x5f9   :  { %v465_v36 = vadd.f32 %v461_v35, %v1616_v12  ;;  %v564_v35 = vld [vmem:[%s2097_s17 + $0x20] sm:$0xff] }
 0x5fb   :  { %v469_v37 = vsel %vm90_vm0, %v465_v36, 0.0 }
 0x5fc   :  { %470 = vadd.xlane.f32.xlu1 %v469_v37 }
 0x5fe   :  { %v462_v38 = vpop.f32.mrf.mxu1 }
 0x5ff   :  { %v463_v39 = vadd.f32 %v1401_v33, %v462_v38  ;;  %v567_v33 = vld [vmem:[%s2097_s17 + $0x38] sm:$0xff]  ;;  %v562_v38 = vld [vmem:[%s2097_s17 + $0x10] sm:$0xff] }
 0x600   :  { %v572_v34 = vpack.c.bf16 %v567_v33, %v566_v32  ;;  %v1337_v32 = vld [vmem:[%s2118_s29 + $0x70] sm:$0xff]  ;;  %v1338_v33 = vld [vmem:[%s2118_s29 + $0x78] sm:$0xff] }
 0x601   :  { %v466_v40 = vadd.f32 %v463_v39, %v1618_v13  ;;  %v563_v39 = vld [vmem:[%s2097_s17 + $0x18] sm:$0xff] }
 0x602   :  { %585 = vmatpush.bf16.msrb.mxu3 %v572_v34  ;;  %v1343_v34 = vld [vmem:[%s2115_s26 + $0x70] sm:$0xff] }
 0x603   :  { %v472_v41 = vsel %vm90_vm0, %v466_v40, 0.0 }
 0x604   :  { %473 = vadd.xlane.f32.xlu2 %v472_v41  ;;  %v560_v41 = vld [vmem:[%s2097_s17] sm:$0xff] }
 0x605   :  { %v569_v43 = vpack.c.bf16 %v561_v42, %v560_v41  ;;  %v1341_v41 = vld [vmem:[%s2115_s26 + $0x60] sm:$0xff]  ;;  %v1342_v42 = vld [vmem:[%s2115_s26 + $0x68] sm:$0xff] }
 0x66f   :  { %v471_v12 = vpop.xlane.xlu1 %470 }
 0x670   :  { %v482_v49 = vmul.f32 %v1766_v48, %v471_v12 }
 0x672   :  { %v484_v50 = vsub.f32 %v465_v36, %v482_v49  ;;  %v565_v36 = vld [vmem:[%s2097_s17 + $0x28] sm:$0xff] }
 0x673   :  { %v571_v37 = vpack.c.bf16 %v565_v36, %v564_v35  ;;  %v837_v36 = vpack.c.bf16 %v1338_v33, %v1337_v32 }
 0x674   :  { %v486_v51 = vmul.f32 %v484_v50, %v484_v50 }
 0x675   :  { %586 = vmatpush.bf16.msrb.mxu3 %v571_v37  ;;  %v1344_v37 = vld [vmem:[%s2115_s26 + $0x78] sm:$0xff] }
 0x676   :  { %v488_v13 = vsel %vm90_vm0, %v486_v51, 0.0 }
 0x677   :  { %v474_v52 = vpop.xlane.xlu2 %473  ;;  %489 = vadd.xlane.f32.xlu1 %v488_v13  ;;  %v1405_v13 = vld [vmem:[%s2096_s18] ss:$0 sm:$0xff] }
 0x678   :  { %v483_v54 = vmul.f32 %v1766_v48, %v474_v52 }
 0x67a   :  { %v485_v55 = vsub.f32 %v466_v40, %v483_v54  ;;  %v570_v40 = vpack.c.bf16 %v563_v39, %v562_v38  ;;  %v1335_v38 = vld [vmem:[%s2118_s29 + $0x60] sm:$0xff]  ;;  %v1336_v39 = vld [vmem:[%s2118_s29 + $0x68] sm:$0xff] }
 0x67c   :  { %v487_v56 = vmul.f32 %v485_v55, %v485_v55  ;;  %587 = vmatpush.bf16.msrb.mxu3 %v570_v40  ;;  %v863_v40 = vpack.c.bf16 %v1344_v37, %v1343_v34 }
 0x67e   :  { %v491_v57 = vsel %vm90_vm0, %v487_v56, 0.0 }
 0x67f   :  { %492 = vadd.xlane.f32.xlu2 %v491_v57 }
 0x680   :  { %588 = vmatpush.bf16.msrb.mxu3 %v569_v43 }
 0x6ea   :  { %v490_v61 = vpop.xlane.xlu1 %489 }
 0x6eb   :  { %v494_v62 = vmul.f32 %v490_v61, %v1766_v48 }
 0x6ed   :  { %v496_v2 = vadd.f32 1e-05, %v494_v62 }
 0x6ef   :  { %1440 = vrsqrt.f32 %v496_v2  ;;  %vm504_vm4 = vweird.f32 %v496_v2 }
 0x6f2   :  { %v493_v3 = vpop.xlane.xlu2 %492 }
 0x6f3   :  { %v495_v4 = vmul.f32 %v493_v3, %v1766_v48 }
 0x6f5   :  { %v1441_v5 = vpop.eup %1440  ;;  %v497_v6 = vadd.f32 1e-05, %v495_v4 }
 0x6f6   :  { %v499_v7 = vmul.f32 %v1441_v5, %v496_v2  ;;  %vm505_vm3 = vweird.f32 %v1441_v5 }
 0x6f7   :  { %1442 = vrsqrt.f32 %v497_v6  ;;  %vm506_vm5 = vmor %vm504_vm4, %vm505_vm3  ;;  %vm514_vm7 = vweird.f32 %v497_v6 }
 0x6f8   :  { %v500_v8 = vmul.f32 %v1441_v5, %v499_v7  ;;  %v1317_v7 = vld [vmem:[%s2118_s29 + $0x50] sm:$0xff] }
 0x6fa   :  { %v501_v9 = vmul.f32 0.5, %v500_v8  ;;  %v1318_v8 = vld [vmem:[%s2118_s29 + $0x58] sm:$0xff] }
 0x6fc   :  { %v502_v10 = vsub.f32 1.5, %v501_v9  ;;  %v1323_v9 = vld [vmem:[%s2115_s26 + $0x50] sm:$0xff] }
 0x6fd   :  { %v1443_v11 = vpop.eup %1442 }
 0x6fe   :  { %v503_v15 = vmul.f32 %v1441_v5, %v502_v10  ;;  %v509_v16 = vmul.f32 %v1443_v11, %v497_v6  ;;  %vm515_vm6 = vweird.f32 %v1443_v11  ;;  %v660_v10 = vpack.c.bf16 %v1318_v8, %v1317_v7 }
 0x6ff   :  { %vm516_vm8 = vmor %vm514_vm7, %vm515_vm6 }
 0x700   :  { %v510_v17 = vmul.f32 %v1443_v11, %v509_v16  ;;  %v507_v18 = vsel %vm506_vm5, %v1441_v5, %v503_v15  ;;  %v1329_v15 = vld [vmem:[%s2087_s7 + $0x50] sm:$0xff]  ;;  %v1330_v16 = vld [vmem:[%s2087_s7 + $0x58] sm:$0xff]  ;;  %675 = vmatpush.bf16.msrb.mxu0 %v660_v10 }
 0x701   :  { %v518_v22 = vmul.f32 %v507_v18, %v484_v50  ;;  %v715_v18 = vpack.c.bf16 %v1330_v16, %v1329_v15 }
 0x702   :  { %v511_v19 = vmul.f32 0.5, %v510_v17 }
 0x703   :  { %v523_v26 = vmul.f32 %v1402_v21, %v518_v22  ;;  %727 = vmatpush.bf16.msrb.mxu2 %v715_v18  ;;  %v1316_v22 = vld [vmem:[%s2118_s29 + $0x48] sm:$0xff] }
 0x704   :  { %v512_v20 = vsub.f32 1.5, %v511_v19 }
 0x705   :  { %v528_v29 = vadd.f32 %v1403_v25, %v523_v26  ;;  %v1327_v26 = vld [vmem:[%s2087_s7 + $0x40] sm:$0xff] }
 0x706   :  { %v513_v23 = vmul.f32 %v1443_v11, %v512_v20 }
 0x708   :  { %v517_v24 = vsel %vm516_vm8, %v1443_v11, %v513_v23  ;;  %v1324_v11 = vld [vmem:[%s2115_s26 + $0x58] sm:$0xff]  ;;  %v1321_v23 = vld [vmem:[%s2115_s26 + $0x40] sm:$0xff] }
 0x709   :  { %v519_v27 = vmul.f32 %v517_v24, %v485_v55  ;;  %v689_v17 = vpack.c.bf16 %v1324_v11, %v1323_v9  ;;  %v1410_v11 = vld [vmem:[%s2089_s8 + $0x2] ss:$0 sm:$0xff] }
 0x70b   :  { %v524_v28 = vmul.f32 %v1402_v21, %v519_v27  ;;  %701 = vmatpush.bf16.msrb.mxu1 %v689_v17  ;;  %v1315_v21 = vld [vmem:[%s2118_s29 + $0x40] sm:$0xff]  ;;  %v1328_v27 = vld [vmem:[%s2087_s7 + $0x48] sm:$0xff] }
 0x70c   :  { %v659_v24 = vpack.c.bf16 %v1316_v22, %v1315_v21  ;;  %v1349_v22 = vld [vmem:[%s2087_s7 + $0x70] sm:$0xff] }
 0x70d   :  { %v529_v30 = vadd.f32 %v1403_v25, %v524_v28  ;;  %v1322_v25 = vld [vmem:[%s2115_s26 + $0x48] sm:$0xff] }
 0x70e   :  { %676 = vmatpush.bf16.msrb.mxu0 %v659_v24  ;;  %v1408_v24 = vld [vmem:[%s2120_s24 + $0x2] ss:$0 sm:$0xff] }
 0x70f   :  { %v534_v31 = vpack.c.bf16 %v529_v30, %v528_v29 }
 0x711   :  { %1313 = vmatmul.msk.bf16.vlgmr.msra.gmra.mxu2 %vm90_vm0, %v534_v31 }
 0x794   :  { %v553_v44 = vpop.f32.mrf.mxu2 }
 0x795   :  { %v554_v46 = vadd.f32 %v1404_v45, %v553_v44 }
 0x797   :  { %v558_v49 = vmax.f32 %v554_v46, 0.0 }
 0x79c   :  { %v555_v47 = vpop.f32.mrf.mxu2 }
 0x79d   :  { %v556_v12 = vadd.f32 %v1404_v45, %v555_v47  ;;  %v836_v45 = vpack.c.bf16 %v1336_v39, %v1335_v38  ;;  %v862_v47 = vpack.c.bf16 %v1342_v42, %v1341_v41 }
 0x79f   :  { %v559_v50 = vmax.f32 %v556_v12, 0.0 }
 0x7a1   :  { %v568_v51 = vpack.c.bf16 %v559_v50, %v558_v49 }
 0x7a3   :  { %1314 = vmatmul.msk.bf16.vlgmr.msrb.gmra.mxu3 %vm577_vm9, %v568_v51 }
 0x826   :  { %v590_v52 = vpop.f32.mrf.mxu3 }
 0x827   :  { %v591_v54 = vadd.f32 %v1405_v13, %v590_v52 }
 0x829   :  { %v595_v55 = vadd.f32 %v591_v54, %v528_v29  ;;  %v688_v29 = vpack.c.bf16 %v1322_v25, %v1321_v23  ;;  %v1350_v23 = vld [vmem:[%s2087_s7 + $0x78] sm:$0xff] }
 0x82b   :  { %v599_v56 = vsel %vm90_vm0, %v595_v55, 0.0  ;;  %702 = vmatpush.bf16.msrb.mxu1 %v688_v29  ;;  %v1347_v29 = vld [vmem:[%s2087_s7 + $0x60] sm:$0xff] }
 0x82c   :  { %600 = vadd.xlane.f32.xlu1 %v599_v56 }
 0x82e   :  { %v592_v57 = vpop.f32.mrf.mxu3 }
 0x82f   :  { %v593_v59 = vadd.f32 %v1405_v13, %v592_v57  ;;  %849 = vmatpush.bf16.msra.mxu1 %v837_v36 }
 0x831   :  { %v596_v60 = vadd.f32 %v593_v59, %v529_v30  ;;  %v714_v30 = vpack.c.bf16 %v1328_v27, %v1327_v26  ;;  %v1406_v59 = vld [vmem:[%s2098_s13] ss:$0 sm:$0xff]  ;;  %v889_v27 = vpack.c.bf16 %v1350_v23, %v1349_v22 }
 0x833   :  { %v602_v14 = vsel %vm90_vm0, %v596_v60, 0.0  ;;  %728 = vmatpush.bf16.msrb.mxu2 %v714_v30  ;;  %850 = vmatpush.bf16.msra.mxu1 %v836_v45  ;;  %v1348_v30 = vld [vmem:[%s2087_s7 + $0x68] sm:$0xff] }
 0x834   :  { %603 = vadd.xlane.f32.xlu2 %v602_v14  ;;  %v888_v33 = vpack.c.bf16 %v1348_v30, %v1347_v29 }
 0x837   :  { %875 = vmatpush.bf16.msra.mxu2 %v863_v40 }
 0x83b   :  { %876 = vmatpush.bf16.msra.mxu2 %v862_v47 }
 0x89f   :  { %v601_v61 = vpop.xlane.xlu1 %600 }
 0x8a0   :  { %v605_v62 = vmul.f32 %v601_v61, %v1766_v48 }
 0x8a2   :  { %v1827_v63 = vsub.f32 %v595_v55, %v605_v62  ;;  %v1407_v62 = vld [vmem:[%s2099_s14] ss:$0 sm:$0xff] }
 0x8a4   :  { %v609_v0 = vmul.f32 %v1827_v63, %v1827_v63 }
 0x8a6   :  { %v611_v1 = vsel %vm90_vm0, %v609_v0, 0.0 }
 0x8a7   :  { %v604_v2 = vpop.xlane.xlu2 %603  ;;  %612 = vadd.xlane.f32.xlu1 %v611_v1 }
 0x8a8   :  { %v606_v3 = vmul.f32 %v604_v2, %v1766_v48 }
 0x8aa   :  { %v1833_v4 = vsub.f32 %v596_v60, %v606_v3 }
 0x8ac   :  { %v610_v5 = vmul.f32 %v1833_v4, %v1833_v4 }
 0x8ae   :  { %v614_v6 = vsel %vm90_vm0, %v610_v5, 0.0 }
 0x8af   :  { %615 = vadd.xlane.f32.xlu2 %v614_v6 }
 0x91a   :  { %v613_v19 = vpop.xlane.xlu1 %612 }
 0x91b   :  { %v617_v20 = vmul.f32 %v613_v19, %v1766_v48 }
 0x91d   :  { %v619_v28 = vadd.f32 1e-05, %v617_v20 }
 0x91f   :  { %1444 = vrsqrt.f32 %v619_v28  ;;  %vm627_vm11 = vweird.f32 %v619_v28 }
 0x922   :  { %v616_v31 = vpop.xlane.xlu2 %615 }
 0x923   :  { %v618_v35 = vmul.f32 %v616_v31, %v1766_v48 }
 0x925   :  { %v1445_v43 = vpop.eup %1444  ;;  %v620_v44 = vadd.f32 1e-05, %v618_v35 }
 0x926   :  { %v622_v46 = vmul.f32 %v1445_v43, %v619_v28  ;;  %vm628_vm10 = vweird.f32 %v1445_v43 }
 0x927   :  { %1446 = vrsqrt.f32 %v620_v44  ;;  %vm629_vm12 = vmor %vm627_vm11, %vm628_vm10  ;;  %vm637_vm14 = vweird.f32 %v620_v44 }
 0x928   :  { %v623_v12 = vmul.f32 %v1445_v43, %v622_v46 }
 0x92a   :  { %v624_v49 = vmul.f32 0.5, %v623_v12 }
 0x92c   :  { %v625_v50 = vsub.f32 1.5, %v624_v49 }
 0x92d   :  { %v1447_v51 = vpop.eup %1446 }
 0x92e   :  { %v626_v13 = vmul.f32 %v1445_v43, %v625_v50  ;;  %v632_v52 = vmul.f32 %v1447_v51, %v620_v44  ;;  %vm638_vm13 = vweird.f32 %v1447_v51 }
 0x92f   :  { %vm639_vm15 = vmor %vm637_vm14, %vm638_vm13 }
 0x930   :  { %v633_v54 = vmul.f32 %v1447_v51, %v632_v52  ;;  %v630_v55 = vsel %vm629_vm12, %v1445_v43, %v626_v13  ;;  %v1413_v43 = vld [vmem:[%s2089_s8 + $0x3] ss:$0 sm:$0xff] }
 0x931   :  { %v641_v60 = vmul.f32 %v630_v55, %v1827_v63  ;;  %v1409_v63 = vld [vmem:[%s2119_s25 + $0x2] ss:$0 sm:$0xff] }
 0x932   :  { %v634_v56 = vmul.f32 0.5, %v633_v54 }
 0x933   :  { %v646_v0 = vmul.f32 %v1406_v59, %v641_v60  ;;  %v1412_v60 = vld [vmem:[%s2119_s25 + $0x3] ss:$0 sm:$0xff] }
 0x934   :  { %v635_v57 = vsub.f32 1.5, %v634_v56 }
 0x935   :  { %v1908_v3 = vadd.f32 %v1407_v62, %v646_v0 }
 0x936   :  { %v636_v14 = vmul.f32 %v1447_v51, %v635_v57 }
 0x938   :  { %v640_v61 = vsel %vm639_vm15, %v1447_v51, %v636_v14 }
 0x939   :  { %v642_v1 = vmul.f32 %v640_v61, %v1833_v4 }
 0x93b   :  { %v647_v2 = vmul.f32 %v1406_v59, %v642_v1 }
 0x93d   :  { %v1910_v5 = vadd.f32 %v1407_v62, %v647_v2 }
 0x93f   :  { %v653_v6 = vpack.c.bf16 %v1910_v5, %v1908_v3 }
 0x941   :  { %1320 = vmatmul.msk.bf16.vlgmr.msrb.gmra.mxu0 %vm90_vm0, %v653_v6  ;;  %1326 = vmatmul.msk.bf16.vlgmr.msrb.gmra.mxu1 %vm90_vm0, %v653_v6 }
 0x942   :  { %1332 = vmatmul.msk.bf16.vlgmr.msrb.gmra.mxu2 %vm90_vm0, %v653_v6 }
 0x951   :  { %1340 = vmatmul.msk.bf16.vlgmr.msra.gmra.mxu1 %vm90_vm0, %v653_v6 }
 0x952   :  { %1346 = vmatmul.msk.bf16.vlgmr.msra.gmra.mxu2 %vm90_vm0, %v653_v6 }
 0x9be   :  { %v704_v4 = vpop.f32.mrf.mxu1  ;;  %v678_v19 = vpop.f32.mrf.mxu0 }
 0x9bf   :  { %v705_v7 = vadd.f32 %v1409_v63, %v704_v4  ;;  %v679_v31 = vadd.f32 %v1408_v24, %v678_v19 }
 0x9c1   :  { %735 = vxpose.xlu1.b32.start [1/2] (short) (narrow) %v705_v7, 16 }
 0x9c5   :  { %v730_v8 = vpop.f32.mrf.mxu2 }
 0x9c6   :  { %v706_v9 = vpop.f32.mrf.mxu1  ;;  %v731_v16 = vadd.f32 %v1410_v11, %v730_v8  ;;  %v680_v21 = vpop.f32.mrf.mxu0 }
 0x9c7   :  { %v707_v10 = vadd.f32 %v1409_v63, %v706_v9  ;;  %v681_v25 = vadd.f32 %v1408_v24, %v680_v21 }
 0x9c9   :  { %736 = vxpose.xlu1.b32.end [2/2] (short) (narrow) %v707_v10, 16  ;;  %v767_v32 = vpack.c.bf16 %v681_v25, %v679_v31 }
 0x9cd   :  { %v732_v15 = vpop.f32.mrf.mxu2 }
 0x9ce   :  { %v733_v17 = vadd.f32 %v1410_v11, %v732_v15  ;;  %v852_v8 = vpop.f32.mrf.mxu1  ;;  %v1411_v11 = vld [vmem:[%s2120_s24 + $0x3] ss:$0 sm:$0xff] }
 0x9d0   :  { %v813_v18 = vpack.c.bf16 %v733_v17, %v731_v16 }
 0x9d2   :  { %824 = vmatpush.bf16.msra.mxu0 %v813_v18  ;;  %v853_v18 = vadd.f32 %v1411_v11, %v852_v8 }
 0x9d5   :  { %v878_v59 = vpop.f32.mrf.mxu2 }
 0x9d6   :  { %v879_v14 = vadd.f32 %v1412_v60, %v878_v59  ;;  %v854_v10 = vpop.f32.mrf.mxu1 }
 0x9d7   :  { %v855_v15 = vadd.f32 %v1411_v11, %v854_v10 }
 0x9d9   :  { %v941_v19 = vpack.c.bf16 %v855_v15, %v853_v18 }
 0x9dd   :  { %v880_v61 = vpop.f32.mrf.mxu2 }
 0x9de   :  { %v881_v62 = vadd.f32 %v1412_v60, %v880_v61 }
 0xa65   :  { %v751_v20 = vpop.trf.xlu1 }
 0xa6d   :  { %v752_v26 = vpop.trf.xlu1 }
 0xa6e   :  { %v768_v28 = vpack.c.bf16 %v752_v26, %v751_v20 }
 0xa70   :  { %779 = vmatpush.bf16.msra.mxu3 %v768_v28 }
 0xa73   :  { %1333 = vmatmul.msk.bf16.vlgmr.msra.gmra.mxu3 %vm190_vm1, %v767_v32 }
 0xa74   :  { %901 = vmatpush.bf16.msrb.mxu3 %v889_v27 }
 0xa78   :  { %902 = vmatpush.bf16.msrb.mxu3 %v888_v33 }
 0xa83   :  { %1352 = vmatmul.msk.bf16.vlgmr.msrb.gmra.mxu3 %vm90_vm0, %v653_v6 }
 0xaf6   :  { %v781_v34 = vpop.f32.mrf.mxu3 }
 0xaf7   :  { %v786_v35 = vmul.f32 0.25, %v781_v34 }
 0xaf9   :  { %v788_v36 = vadd.f32 %v786_v35, %v1681_v53 }
 0xafb   :  { %v790_v37 = vsel %vm190_vm1, %v788_v36, -inf }
 0xafc   :  { %791 = vmax.xlane.f32.xlu2 %v790_v37 }
 0xafe   :  { %v783_v38 = vpop.f32.mrf.mxu3 }
 0xaff   :  { %v787_v39 = vmul.f32 0.25, %v783_v38 }
 0xb01   :  { %v789_v40 = vadd.f32 %v787_v39, %v1688_v58 }
 0xb03   :  { %v793_v41 = vsel %vm190_vm1, %v789_v40, -inf }
 0xb04   :  { %794 = vmax.xlane.f32.xlu2 %v793_v41 }
 0xb06   :  { %v904_v42 = vpop.f32.mrf.mxu3 }
 0xb07   :  { %v905_v45 = vadd.f32 %v1413_v43, %v904_v42 }
 0xb0e   :  { %v906_v44 = vpop.f32.mrf.mxu3 }
 0xb0f   :  { %v907_v46 = vadd.f32 %v1413_v43, %v906_v44 }
 0xb11   :  { %v987_v47 = vpack.c.bf16 %v907_v46, %v905_v45  ;;  %v1357_v45 = vld [vmem:[%s2090_s9 + $0x30] sm:$0xff]  ;;  %v1358_v46 = vld [vmem:[%s2090_s9 + $0x38] sm:$0xff] }
 0xb13   :  { %998 = vmatpush.bf16.msrb.mxu1 %v987_v47  ;;  %v1022_v47 = vpack.c.bf16 %v1358_v46, %v1357_v45 }
 0xb15   :  { %1037 = vmatpush.bf16.msrb.mxu2 %v1022_v47 }
 0xb6f   :  { %v792_v12 = vpop.xlane.xlu2 %791 }
 0xb70   :  { %v796_v49 = vsub.f32 %v788_v36, %v792_v12 }
 0xb72   :  { %v798_v50 = vmul.f32 1.442695, %v796_v49 }
 0xb74   :  { %1448 = vpow2.f32 %v798_v50 }
 0xb77   :  { %v795_v51 = vpop.xlane.xlu2 %794 }
 0xb78   :  { %v797_v13 = vsub.f32 %v789_v40, %v795_v51  ;;  %v1355_v51 = vld [vmem:[%s2090_s9 + $0x20] sm:$0xff] }
 0xb7a   :  { %v1449_v52 = vpop.eup %1448  ;;  %v800_v54 = vmul.f32 1.442695, %v797_v13  ;;  %v1356_v13 = vld [vmem:[%s2090_s9 + $0x28] sm:$0xff] }
 0xb7b   :  { %v802_v55 = vsel %vm190_vm1, %v1449_v52, 0.0 }
 0xb7c   :  { %1450 = vpow2.f32 %v800_v54  ;;  %803 = vadd.xlane.f32.xlu2 %v802_v55 }
 0xb82   :  { %v1451_v56 = vpop.eup %1450 }
 0xb83   :  { %v805_v57 = vsel %vm190_vm1, %v1451_v56, 0.0 }
 0xb84   :  { %806 = vadd.xlane.f32.xlu2 %v805_v57 }
 0xbad   :  { %909 = vxpose.xlu2.b32.start [1/2] (short) (narrow) %v879_v14, 16  ;;  %v1414_v14 = vld [vmem:[%s2091_s10 + $0x1] ss:$0 sm:$0xff] }
 0xbb5   :  { %910 = vxpose.xlu2.b32.end [2/2] (short) (narrow) %v881_v62, 16 }
 0xbef   :  { %v804_v0 = vpop.xlane.xlu2 %803 }
 0xbf0   :  { %1452 = vrcp.f32 %v804_v0 }
 0xbf6   :  { %v1453_v2 = vpop.eup %1452 }
 0xbf7   :  { %v807_v1 = vpop.xlane.xlu2 %806  ;;  %v810_v63 = vmul.f32 %v1453_v2, %v1449_v52  ;;  %v1021_v52 = vpack.c.bf16 %v1356_v13, %v1355_v51  ;;  %v1375_v51 = vld [vmem:[%s2097_s17 + $0x70] sm:$0xff]  ;;  %v1376_v13 = vld [vmem:[%s2097_s17 + $0x78] sm:$0xff] }
 0xbf8   :  { %1454 = vrcp.f32 %v807_v1 }
 0xbf9   :  { %1038 = vmatpush.bf16.msrb.mxu2 %v1021_v52  ;;  %v1150_v52 = vpack.c.bf16 %v1376_v13, %v1375_v51 }
 0xbfe   :  { %v1455_v6 = vpop.eup %1454 }
 0xbff   :  { %v811_v4 = vmul.f32 %v1455_v6, %v1451_v56 }
 0xc01   :  { %v812_v7 = vpack.c.bf16 %v811_v4, %v810_v63 }
 0xc03   :  { %1334 = vmatmul.msk.bf16.vlgmr.msra.gmra.mxu0 %vm190_vm1, %v812_v7 }
 0xc46   :  { %v925_v9 = vpop.trf.xlu2 }
 0xc4e   :  { %v926_v16 = vpop.trf.xlu2 }
 0xc4f   :  { %v942_v17 = vpack.c.bf16 %v926_v16, %v925_v9 }
 0xc51   :  { %953 = vmatpush.bf16.msrb.mxu0 %v942_v17 }
 0xc54   :  { %1353 = vmatmul.msk.bf16.vlgmr.msrb.gmra.mxu0 %vm190_vm1, %v941_v19  ;;  %v1366_v19 = vld [vmem:[%s2095_s15 + $0x38] sm:$0xff] }
 0xc55   :  { %1163 = vmatpush.bf16.msra.mxu0 %v1150_v52 }
 0xc80   :  { %v826_v20 = vpop.f32.mrf.mxu0 }
 0xc88   :  { %v828_v21 = vpop.f32.mrf.mxu0 }
 0xcd1   :  { %v955_v22 = vpop.f32.mrf.mxu0 }
 0xcd2   :  { %v960_v23 = vmul.f32 0.25, %v955_v22 }
 0xcd4   :  { %v962_v24 = vadd.f32 %v960_v23, %v1681_v53  ;;  %v1363_v23 = vld [vmem:[%s2095_s15 + $0x20] sm:$0xff] }
 0xcd6   :  { %v964_v25 = vsel %vm190_vm1, %v962_v24, -inf }
 0xcd7   :  { %965 = vmax.xlane.f32.xlu1 %v964_v25 }
 0xcd9   :  { %v957_v26 = vpop.f32.mrf.mxu0 }
 0xcda   :  { %v961_v27 = vmul.f32 0.25, %v957_v26 }
 0xcdc   :  { %v963_v28 = vadd.f32 %v961_v27, %v1688_v58 }
 0xcde   :  { %v967_v29 = vsel %vm190_vm1, %v963_v28, -inf }
 0xcdf   :  { %968 = vmax.xlane.f32.xlu0 %v967_v29 }
 0xd4a   :  { %v966_v30 = vpop.xlane.xlu1 %965 }
 0xd4b   :  { %v970_v31 = vsub.f32 %v962_v24, %v966_v30  ;;  %v1364_v24 = vld [vmem:[%s2095_s15 + $0x28] sm:$0xff] }
 0xd4c   :  { %v1111_v26 = vpack.c.bf16 %v1364_v24, %v1363_v23 }
 0xd4d   :  { %v972_v32 = vmul.f32 1.442695, %v970_v31 }
 0xd4f   :  { %1456 = vpow2.f32 %v972_v32 }
 0xd52   :  { %v969_v33 = vpop.xlane.xlu0 %968 }
 0xd53   :  { %v971_v34 = vsub.f32 %v963_v28, %v969_v33 }
 0xd55   :  { %v1457_v35 = vpop.eup %1456  ;;  %v974_v36 = vmul.f32 1.442695, %v971_v34 }
 0xd56   :  { %v976_v53 = vsel %vm190_vm1, %v1457_v35, 0.0 }
 0xd57   :  { %1458 = vpow2.f32 %v974_v36  ;;  %977 = vadd.xlane.f32.xlu2 %v976_v53 }
 0xd5d   :  { %v1459_v37 = vpop.eup %1458 }
 0xd5e   :  { %v979_v38 = vsel %vm190_vm1, %v1459_v37, 0.0 }
 0xd5f   :  { %980 = vadd.xlane.f32.xlu0 %v979_v38 }
 0xdca   :  { %v978_v58 = vpop.xlane.xlu2 %977 }
 0xdcb   :  { %1460 = vrcp.f32 %v978_v58 }
 0xdd1   :  { %v1461_v40 = vpop.eup %1460 }
 0xdd2   :  { %v981_v39 = vpop.xlane.xlu0 %980  ;;  %v984_v42 = vmul.f32 %v1461_v40, %v1457_v35  ;;  %v1415_v40 = vld [vmem:[%s2092_s11 + $0x1] ss:$0 sm:$0xff] }
 0xdd3   :  { %1462 = vrcp.f32 %v981_v39 }
 0xdd9   :  { %v1463_v41 = vpop.eup %1462 }
 0xdda   :  { %v985_v43 = vmul.f32 %v1463_v41, %v1459_v37 }
 0xddc   :  { %v986_v44 = vpack.c.bf16 %v985_v43, %v984_v42 }
 0xdde   :  { %1354 = vmatmul.msk.bf16.vlgmr.msrb.gmra.mxu1 %vm190_vm1, %v986_v44  ;;  %v1416_v44 = vld [vmem:[%s2093_s12 + $0x1] ss:$0 sm:$0xff] }
 0xe5b   :  { %v1000_v12 = vpop.f32.mrf.mxu1 }
 0xe63   :  { %v1002_v49 = vpop.f32.mrf.mxu1 }
 0xe64   :  { %v1390_v50 = vpack.i.bf16 %v1002_v49, %v1000_v12 }
 0xe66   :  { %1391 = vrot.lane.b32.xlu0 %v1390_v50, %s1480_s5 }
 0xed8   :  { %v1392_v54 = vpop.permute.xlu0 %1391 }
 0xed9   :  { %v1394_v55 = vunpack.i.h.bf16 %v1392_v54  ;;  %v1393_v56 = vunpack.i.l.bf16 %v1392_v54  ;;  %v1373_v54 = vld [vmem:[%s2097_s17 + $0x60] sm:$0xff] }
 0xedb   :  { %v1014_v57 = vsel %vm190_vm1, %v828_v21, %v1394_v55  ;;  %v1013_v59 = vsel %vm190_vm1, %v826_v20, %v1393_v56  ;;  %v1374_v55 = vld [vmem:[%s2097_s17 + $0x68] sm:$0xff] }
 0xedc   :  { %v1020_v60 = vpack.c.bf16 %v1014_v57, %v1013_v59  ;;  %v1149_v56 = vpack.c.bf16 %v1374_v55, %v1373_v54  ;;  %v1371_v57 = vld [vmem:[%s2097_s17 + $0x50] sm:$0xff]  ;;  %v1372_v59 = vld [vmem:[%s2097_s17 + $0x58] sm:$0xff]  ;;  %v1420_v54 = vld [vmem:[%s2099_s14 + $0x1] ss:$0 sm:$0xff] }
 0xede   :  { %1360 = vmatmul.msk.bf16.vlgmr.msrb.gmra.mxu2 %vm90_vm0, %v1020_v60  ;;  %1164 = vmatpush.bf16.msra.mxu0 %v1149_v56  ;;  %v1148_v60 = vpack.c.bf16 %v1372_v59, %v1371_v57 }
 0xee2   :  { %1165 = vmatpush.bf16.msra.mxu0 %v1148_v60 }
 0xf61   :  { %v1040_v61 = vpop.f32.mrf.mxu2 }
 0xf62   :  { %v1041_v62 = vadd.f32 %v1414_v14, %v1040_v61  ;;  %v1370_v61 = vld [vmem:[%s2097_s17 + $0x48] sm:$0xff] }
 0xf64   :  { %v1045_v0 = vadd.f32 %v1041_v62, %v1908_v3 }
 0xf66   :  { %v1051_v1 = vsel %vm90_vm0, %v1045_v0, 0.0 }
 0xf67   :  { %1052 = vadd.xlane.f32.xlu0 %v1051_v1  ;;  %v1417_v1 = vld [vmem:[%s2094_s16 + $0x1] ss:$0 sm:$0xff] }
 0xf69   :  { %v1042_v2 = vpop.f32.mrf.mxu2 }
 0xf6a   :  { %v1043_v6 = vadd.f32 %v1414_v14, %v1042_v2  ;;  %v1369_v14 = vld [vmem:[%s2097_s17 + $0x40] sm:$0xff] }
 0xf6b   :  { %v1147_v62 = vpack.c.bf16 %v1370_v61, %v1369_v14  ;;  %v1421_v61 = vld [vmem:[%s2100_s20] ss:$0 sm:$0xff] }
 0xf6c   :  { %v1046_v63 = vadd.f32 %v1043_v6, %v1910_v5  ;;  %v1365_v5 = vld [vmem:[%s2095_s15 + $0x30] sm:$0xff] }
 0xf6d   :  { %v1112_v20 = vpack.c.bf16 %v1366_v19, %v1365_v5  ;;  %1166 = vmatpush.bf16.msra.mxu0 %v1147_v62 }
 0xf6e   :  { %v1054_v4 = vsel %vm90_vm0, %v1046_v63, 0.0 }
 0xf6f   :  { %1055 = vadd.xlane.f32.xlu1 %v1054_v4  ;;  %1127 = vmatpush.bf16.msra.mxu3 %v1112_v20 }
 0xf73   :  { %1128 = vmatpush.bf16.msra.mxu3 %v1111_v26 }
 0xfda   :  { %v1053_v7 = vpop.xlane.xlu0 %1052 }
 0xfdb   :  { %v1057_v8 = vmul.f32 %v1053_v7, %v1766_v48 }
 0xfdd   :  { %v1059_v9 = vsub.f32 %v1045_v0, %v1057_v8 }
 0xfdf   :  { %v1061_v10 = vmul.f32 %v1059_v9, %v1059_v9 }
 0xfe1   :  { %v1063_v11 = vsel %vm90_vm0, %v1061_v10, 0.0 }
 0xfe2   :  { %v1056_v15 = vpop.xlane.xlu1 %1055  ;;  %1064 = vadd.xlane.f32.xlu1 %v1063_v11 }
 0xfe3   :  { %v1058_v3 = vmul.f32 %v1056_v15, %v1766_v48 }
 0xfe5   :  { %v1060_v16 = vsub.f32 %v1046_v63, %v1058_v3 }
 0xfe7   :  { %v1062_v17 = vmul.f32 %v1060_v16, %v1060_v16 }
 0xfe9   :  { %v1066_v18 = vsel %vm90_vm0, %v1062_v17, 0.0 }
 0xfea   :  { %1067 = vadd.xlane.f32.xlu1 %v1066_v18 }
0x1055   :  { %v1065_v21 = vpop.xlane.xlu1 %1064 }
0x1056   :  { %v1069_v22 = vmul.f32 %v1065_v21, %v1766_v48 }
0x1058   :  { %v1071_v25 = vadd.f32 1e-05, %v1069_v22 }
0x105a   :  { %1464 = vrsqrt.f32 %v1071_v25  ;;  %vm1079_vm2 = vweird.f32 %v1071_v25 }
0x105d   :  { %v1068_v27 = vpop.xlane.xlu1 %1067 }
0x105e   :  { %v1070_v28 = vmul.f32 %v1068_v27, %v1766_v48 }
0x1060   :  { %v1465_v29 = vpop.eup %1464  ;;  %v1072_v30 = vadd.f32 1e-05, %v1070_v28 }
0x1061   :  { %v1074_v31 = vmul.f32 %v1465_v29, %v1071_v25  ;;  %vm1080_vm1 = vweird.f32 %v1465_v29 }
0x1062   :  { %1466 = vrsqrt.f32 %v1072_v30  ;;  %vm1081_vm3 = vmor %vm1079_vm2, %vm1080_vm1  ;;  %vm1089_vm5 = vweird.f32 %v1072_v30 }
0x1063   :  { %v1075_v32 = vmul.f32 %v1465_v29, %v1074_v31 }
0x1065   :  { %v1076_v33 = vmul.f32 0.5, %v1075_v32 }
0x1067   :  { %v1077_v34 = vsub.f32 1.5, %v1076_v33 }
0x1068   :  { %v1467_v35 = vpop.eup %1466 }
0x1069   :  { %v1078_v36 = vmul.f32 %v1465_v29, %v1077_v34  ;;  %v1084_v53 = vmul.f32 %v1467_v35, %v1072_v30  ;;  %vm1090_vm4 = vweird.f32 %v1467_v35  ;;  %v1236_v30 = vld [vmem:[%s2101_s19 + $0x18] sm:$0xff]  ;;  %v1233_v34 = vld [vmem:[%s2101_s19] sm:$0xff] }
0x106a   :  { %vm1091_vm6 = vmor %vm1089_vm5, %vm1090_vm4 }
0x106b   :  { %v1085_v37 = vmul.f32 %v1467_v35, %v1084_v53  ;;  %v1082_v38 = vsel %vm1081_vm3, %v1465_v29, %v1078_v36  ;;  %v1235_v29 = vld [vmem:[%s2101_s19 + $0x10] sm:$0xff] }
0x106c   :  { %v1093_v41 = vmul.f32 %v1082_v38, %v1059_v9  ;;  %v1418_v9 = vld [vmem:[%s2096_s18 + $0x1] ss:$0 sm:$0xff]  ;;  %v1239_v31 = vpack.c.bf16 %v1236_v30, %v1235_v29 }
0x106d   :  { %v1086_v58 = vmul.f32 0.5, %v1085_v37 }
0x106e   :  { %v1098_v45 = vmul.f32 %v1415_v40, %v1093_v41  ;;  %1253 = vmatpush.bf16.msra.mxu1 %v1239_v31 }
0x106f   :  { %v1087_v39 = vsub.f32 1.5, %v1086_v58 }
0x1070   :  { %v1103_v12 = vadd.f32 %v1416_v44, %v1098_v45 }
0x1071   :  { %v1088_v42 = vmul.f32 %v1467_v35, %v1087_v39 }
0x1073   :  { %v1092_v43 = vsel %vm1091_vm6, %v1467_v35, %v1088_v42  ;;  %v1234_v35 = vld [vmem:[%s2101_s19 + $0x8] sm:$0xff] }
0x1074   :  { %v1094_v46 = vmul.f32 %v1092_v43, %v1060_v16  ;;  %v1238_v53 = vpack.c.bf16 %v1234_v35, %v1233_v34 }
0x1076   :  { %v1099_v47 = vmul.f32 %v1415_v40, %v1094_v46  ;;  %1254 = vmatpush.bf16.msra.mxu1 %v1238_v53 }
0x1078   :  { %v1104_v49 = vadd.f32 %v1416_v44, %v1099_v47 }
0x107a   :  { %v1110_v50 = vpack.c.bf16 %v1104_v49, %v1103_v12 }
0x107c   :  { %1368 = vmatmul.msk.bf16.vlgmr.msra.gmra.mxu3 %vm90_vm0, %v1110_v50 }
0x10ff   :  { %v1130_v0 = vpop.f32.mrf.mxu3 }
0x1100   :  { %v1131_v2 = vadd.f32 %v1417_v1, %v1130_v0 }
0x1102   :  { %v1135_v4 = vmax.f32 %v1131_v2, 0.0 }
0x1107   :  { %v1132_v6 = vpop.f32.mrf.mxu3 }
0x1108   :  { %v1133_v63 = vadd.f32 %v1417_v1, %v1132_v6 }
0x110a   :  { %v1136_v7 = vmax.f32 %v1133_v63, 0.0 }
0x110c   :  { %v1146_v8 = vpack.c.bf16 %v1136_v7, %v1135_v4 }
0x110e   :  { %1378 = vmatmul.msk.bf16.vlgmr.msra.gmra.mxu0 %vm577_vm9, %v1146_v8 }
0x118b   :  { %v1168_v10 = vpop.f32.mrf.mxu0 }
0x118c   :  { %v1169_v11 = vadd.f32 %v1418_v9, %v1168_v10 }
0x118e   :  { %v1173_v15 = vadd.f32 %v1169_v11, %v1103_v12 }
0x1190   :  { %v1179_v3 = vsel %vm90_vm0, %v1173_v15, 0.0 }
0x1191   :  { %1180 = vadd.xlane.f32.xlu1 %v1179_v3 }
0x1193   :  { %v1170_v16 = vpop.f32.mrf.mxu0 }
0x1194   :  { %v1171_v17 = vadd.f32 %v1418_v9, %v1170_v16 }
0x1196   :  { %v1174_v18 = vadd.f32 %v1171_v17, %v1104_v49 }
0x1198   :  { %v1182_v5 = vsel %vm90_vm0, %v1174_v18, 0.0 }
0x1199   :  { %1183 = vadd.xlane.f32.xlu0 %v1182_v5 }
0x1204   :  { %v1181_v19 = vpop.xlane.xlu1 %1180 }
0x1205   :  { %v1185_v20 = vmul.f32 %v1181_v19, %v1766_v48 }
0x1207   :  { %v1187_v21 = vsub.f32 %v1173_v15, %v1185_v20 }
0x1209   :  { %v1189_v22 = vmul.f32 %v1187_v21, %v1187_v21 }
0x120b   :  { %v1191_v23 = vsel %vm90_vm0, %v1189_v22, 0.0 }
0x120c   :  { %v1184_v24 = vpop.xlane.xlu0 %1183  ;;  %1192 = vadd.xlane.f32.xlu1 %v1191_v23 }
0x120d   :  { %v1186_v25 = vmul.f32 %v1184_v24, %v1766_v48 }
0x120f   :  { %v1188_v26 = vsub.f32 %v1174_v18, %v1186_v25 }
0x1211   :  { %v1190_v27 = vmul.f32 %v1188_v26, %v1188_v26 }
0x1213   :  { %v1194_v28 = vsel %vm90_vm0, %v1190_v27, 0.0 }
0x1214   :  { %1195 = vadd.xlane.f32.xlu2 %v1194_v28 }
0x127f   :  { %v1193_v32 = vpop.xlane.xlu1 %1192 }
0x1280   :  { %v1197_v33 = vmul.f32 %v1193_v32, %v1766_v48 }
0x1282   :  { %v1199_v36 = vadd.f32 1e-05, %v1197_v33 }
0x1284   :  { %1468 = vrsqrt.f32 %v1199_v36  ;;  %vm1207_vm8 = vweird.f32 %v1199_v36 }
0x1287   :  { %v1196_v37 = vpop.xlane.xlu2 %1195 }
0x1288   :  { %v1198_v38 = vmul.f32 %v1196_v37, %v1766_v48  ;;  %v1419_v48 = vld [vmem:[%s2098_s13 + $0x1] ss:$0 sm:$0xff] }
0x128a   :  { %v1469_v58 = vpop.eup %1468  ;;  %v1200_v39 = vadd.f32 1e-05, %v1198_v38 }
0x128b   :  { %v1202_v40 = vmul.f32 %v1469_v58, %v1199_v36  ;;  %vm1208_vm7 = vweird.f32 %v1469_v58 }
0x128c   :  { %1470 = vrsqrt.f32 %v1200_v39  ;;  %vm1209_vm9 = vmor %vm1207_vm8, %vm1208_vm7  ;;  %vm1217_vm11 = vweird.f32 %v1200_v39 }
0x128d   :  { %v1203_v41 = vmul.f32 %v1469_v58, %v1202_v40 }
0x128f   :  { %v1204_v42 = vmul.f32 0.5, %v1203_v41 }
0x1291   :  { %v1205_v43 = vsub.f32 1.5, %v1204_v42 }
0x1292   :  { %v1471_v44 = vpop.eup %1470 }
0x1293   :  { %v1206_v45 = vmul.f32 %v1469_v58, %v1205_v43  ;;  %v1212_v46 = vmul.f32 %v1471_v44, %v1200_v39  ;;  %vm1218_vm10 = vweird.f32 %v1471_v44 }
0x1294   :  { %vm1219_vm12 = vmor %vm1217_vm11, %vm1218_vm10 }
0x1295   :  { %v1213_v47 = vmul.f32 %v1471_v44, %v1212_v46  ;;  %v1210_v12 = vsel %vm1209_vm9, %v1469_v58, %v1206_v45 }
0x1296   :  { %v1221_v51 = vmul.f32 %v1210_v12, %v1187_v21 }
0x1297   :  { %v1214_v49 = vmul.f32 0.5, %v1213_v47 }
0x1298   :  { %v1226_v55 = vmul.f32 %v1419_v48, %v1221_v51 }
0x1299   :  { %v1215_v50 = vsub.f32 1.5, %v1214_v49 }
0x129a   :  { %v1231_v59 = vadd.f32 %v1420_v54, %v1226_v55 }
0x129b   :  { %v1216_v13 = vmul.f32 %v1471_v44, %v1215_v50 }
0x129d   :  { %v1220_v52 = vsel %vm1219_vm12, %v1471_v44, %v1216_v13 }
0x129e   :  { %v1222_v56 = vmul.f32 %v1220_v52, %v1188_v26 }
0x12a0   :  { %v1227_v57 = vmul.f32 %v1419_v48, %v1222_v56 }
0x12a2   :  { %v1232_v60 = vadd.f32 %v1420_v54, %v1227_v57 }
0x12a4   :  { %v1237_v14 = vpack.c.bf16 %v1232_v60, %v1231_v59 }
0x12a6   :  { %1381 = vmatmul.msk.bf16.vlgmr.msra.gmra.mxu1 %vm90_vm0, %v1237_v14 }
0x1323   :  { %v1256_v62 = vpop.f32.mrf.mxu1 }
0x1324   :  { %v1257_v0 = vadd.f32 %v1421_v61, %v1256_v62 }
0x1326   :  { %1261 = vmax.xlane.f32.xlu0 %v1257_v0 }
0x132b   :  { %v1258_v1 = vpop.f32.mrf.mxu1 }
0x132c   :  { %v1259_v2 = vadd.f32 %v1421_v61, %v1258_v1 }
0x132e   :  { %1263 = vmax.xlane.f32.xlu1 %v1259_v2 }
0x1399   :  { %v1262_v6 = vpop.xlane.xlu0 %1261 }
0x139a   :  { %v1265_v63 = vsub.f32 %v1257_v0, %v1262_v6 }
0x139c   :  { %v1267_v4 = vmul.f32 1.442695, %v1265_v63 }
0x139e   :  { %1472 = vpow2.f32 %v1267_v4 }
0x13a1   :  { %v1264_v7 = vpop.xlane.xlu1 %1263 }
0x13a2   :  { %v1266_v8 = vsub.f32 %v1259_v2, %v1264_v7 }
0x13a4   :  { %v1473_v9 = vpop.eup %1472  ;;  %v1269_v10 = vmul.f32 1.442695, %v1266_v8 }
0x13a5   :  { %1271 = vadd.xlane.f32.xlu2 %v1473_v9 }
0x13a6   :  { %1474 = vpow2.f32 %v1269_v10 }
0x13ac   :  { %v1475_v11 = vpop.eup %1474 }
0x13ad   :  { %1273 = vadd.xlane.f32.xlu0 %v1475_v11 }
0x1418   :  { %v1272_v15 = vpop.xlane.xlu2 %1271 }
0x1419   :  { %1476 = vlog2.f32 %v1272_v15 }
0x141f   :  { %v1477_v3 = vpop.eup %1476 }
0x1420   :  { %v1276_v16 = vmul.f32 0.6931472, %v1477_v3  ;;  %v1274_v17 = vpop.xlane.xlu0 %1273 }
0x1421   :  { %1478 = vlog2.f32 %v1274_v17 }
0x1422   :  { %v1279_v18 = vsub.f32 %v1265_v63, %v1276_v16 }
0x1424   :  { %1281 = vst [vmem:[%s2102_s21] sm:$0xff] %v1279_v18 }
0x1427   :  { %v1479_v5 = vpop.eup %1478 }
0x1428   :  { %v1278_v19 = vmul.f32 0.6931472, %v1479_v5 }
0x142a   :  { %v1280_v20 = vsub.f32 %v1266_v8, %v1278_v19 }
0x142c   :  { %1282 = vst [vmem:[%s2102_s21 + $0x8] sm:$0xff] %v1280_v20 }

</bundles_post_ra>
